<compile_context>
chip_gen: v5e
topology: v5e:2x2
jax: 0.10.0
libtpu: 0.0.40
codegen_flags: <defaults>
</compile_context>

<pallas_src>
import numpy as np
import jax
import jax.numpy as jnp
from jax.experimental import pallas as pl
from jax.experimental.pallas import tpu as pltpu

_NEG_BIG = -1e30  # padded-logit bias: exp(_NEG_BIG - max) underflows to exactly 0 in f32
_LANE = 128


def _round_up(x, m):
    return (x + m - 1) // m * m


def _conv_pool_fused(w, b, l_in, in_rows, lane=_LANE):
    """Lower VALID Conv1d + max_pool1d(2) to a single fused [even | odd] matmul operand.

    Input rows are channel-major flattened:               row = ci * l_in + t
    Output cols (per half) are channel-major pooled pos:  col = co * l_pool + tp
    The even half gives the conv output at position 2*tp, the odd half at 2*tp + 1;
    pooling is then an elementwise max of the two 128-lane halves.  Output columns are
    zero-padded to a multiple of `lane`; rows >= c_in*l_in stay zero (padded inputs).
    """
    w = np.asarray(w, dtype=np.float32)          # (c_out, c_in, K)
    b = np.asarray(b, dtype=np.float32)          # (c_out,)
    c_out, c_in, k = w.shape
    l_out = l_in - k + 1
    l_pool = l_out // 2                          # max_pool1d floors, like torch
    n_cols = c_out * l_pool
    op = _round_up(max(n_cols, 1), lane)
    assert in_rows >= c_in * l_in
    m = np.zeros((in_rows, 2 * op), np.float32)  # [even | odd] halves, each op wide
    bias = np.zeros((1, op), np.float32)
    for co in range(c_out):
        for tp in range(l_pool):
            col = co * l_pool + tp
            bias[0, col] = b[co]
            for ci in range(c_in):
                for dk in range(k):
                    m[ci * l_in + 2 * tp + dk, col] += w[co, ci, dk]           # even
                    m[ci * l_in + 2 * tp + 1 + dk, op + col] += w[co, ci, dk]  # odd
    return m, bias, l_pool, op


def prepare_cnn_params(params, seq_len, lane=_LANE):
    """One-time host-side lowering of torch-layout parameters into kernel operands."""
    w1, b1, w2, b2, w3, b3, w4, b4 = params
    c_in = w1.shape[1]

    # conv1: natural (unpadded) 80-wide input rows; output padded to 128 lanes.
    m1, b1r, l1p, p1 = _conv_pool_fused(w1, b1, seq_len, c_in * seq_len, lane)
    # conv2: input rows = conv1's padded output width (extra rows stay zero).
    m2, b2r, l2p, p2 = _conv_pool_fused(w2, b2, l1p, p1, lane)

    flat = w2.shape[0] * l2p                     # channel-major == torch x.view(-1, 20)
    assert flat == w3.shape[1], (flat, w3.shape)

    # fc1: (p2 -> p3) zero-padded, lane-dense.
    h_out = w3.shape[0]
    p3 = _round_up(h_out, lane)
    w3p = np.zeros((p2, p3), np.float32)
    w3p[:flat, :h_out] = np.asarray(w3, np.float32).T
    b3p = np.zeros((1, p3), np.float32)
    b3p[0, :h_out] = np.asarray(b3, np.float32)

    # fc2: (p3 -> p4), padded logits get bias -1e30 so they vanish from log_softmax.
    o = w4.shape[0]
    p4 = _round_up(max(o, 1), lane)
    w4p = np.zeros((p3, p4), np.float32)
    w4p[:h_out, :o] = np.asarray(w4, np.float32).T
    b4p = np.full((1, p4), _NEG_BIG, np.float32)
    b4p[0, :o] = np.asarray(b4, np.float32)

    ops = (m1, b1r, m2, b2r, w3p, b3p, w4p, b4p)
    return tuple(jnp.asarray(a) for a in ops)


def cnn_fused_kernel(x_ref, m1_ref, b1_ref, m2_ref, b2_ref, w3_ref, b3_ref,
                     w4_ref, b4_ref, o_ref):
    x = x_ref[...]                                               # (TB, C_in*L) f32

    # conv1 -> max_pool1d(2) -> ReLU: one fused [even|odd] matmul, pool = max of halves.
    he = jnp.dot(x, m1_ref[...], preferred_element_type=jnp.float32)   # (TB, 2*128)
    half = he.shape[-1] // 2
    h = jnp.maximum(jnp.maximum(he[:, :half], he[:, half:]) + b1_ref[...], 0.0)

    # conv2 (conv2_drop: identity at inference) -> max_pool1d(2) -> ReLU.
    he = jnp.dot(h, m2_ref[...], preferred_element_type=jnp.float32)   # (TB, 2*128)
    half = he.shape[-1] // 2
    h = jnp.maximum(jnp.maximum(he[:, :half], he[:, half:]) + b2_ref[...], 0.0)

    # fc1 -> ReLU   (F.dropout: identity at inference)
    # TODO(synk): training-mode stochastic dropout masking is not implemented.
    h = jnp.maximum(
        jnp.dot(h, w3_ref[...], preferred_element_type=jnp.float32) + b3_ref[...], 0.0)

    # fc2 into a lane-dense 128-wide slab; padded lanes carry bias == -1e30.
    logits = jnp.dot(h, w4_ref[...], preferred_element_type=jnp.float32) + b4_ref[...]

    # log_softmax along lanes (padded lanes: exp(-huge) == 0, no contribution).
    m = jnp.max(logits, axis=-1, keepdims=True)
    z = logits - m
    lse = jnp.log(jnp.sum(jnp.exp(z), axis=-1, keepdims=True))
    o_ref[...] = (z - lse).astype(o_ref.dtype)


def cnn_forward(x, prepared, *, out_size, tile_b=1024):
    """x: (B, C_in, L) in the PyTorch Conv1d layout.  Returns (B, out_size) log-probs."""
    m1, b1r, m2, b2r, w3p, b3p, w4p, b4p = prepared
    bsz = x.shape[0]
    feat = x.shape[1] * x.shape[2]
    x2d = x.reshape(bsz, feat)                   # contiguous -> metadata-only reshape

    # Fat, sublane-aligned batch tiles to amortize per-step overhead, but keep the grid
    # length >= 2 when B allows so the "parallel" axis can feed both v7x TensorCores.
    tb = min(tile_b, _round_up(bsz, 8))
    if bsz >= 16:
        tb = min(tb, max(_round_up((bsz + 1) // 2, 8), 8))
    bp = _round_up(bsz, tb)
    if bp != bsz:
        x2d = jnp.pad(x2d, ((0, bp - bsz), (0, 0)))
    op = w4p.shape[1]

    weight_ops = (m1, b1r, m2, b2r, w3p, b3p, w4p, b4p)
    weight_bytes = sum(int(np.prod(a.shape)) * 4 for a in weight_ops)

    def const(a):
        # Constant index_map -> weights stay resident in VMEM across all batch tiles.
        # (pl.Buffered(1) single-buffering would shave a little more VMEM; skipped as
        #  pure hygiene — the weights are ~0.4 MiB total.)
        return pl.BlockSpec(a.shape, lambda i: (0, 0))

    compiler_kwargs = dict(dimension_semantics=("parallel",))
    # Rough per-step VMEM budget (double-buffered activation tiles + resident weights +
    # in-kernel intermediates).  Only raise the scoped limit when a very large tile
    # would exceed v5e's 16 MiB default; otherwise leave compiler defaults alone.
    vmem_est = 2 * tb * (feat + op) * 4 + 6 * tb * 2 * _LANE * 4 + 2 * weight_bytes
    if vmem_est > (14 << 20):
        compiler_kwargs["vmem_limit_bytes"] = int(min(2 * vmem_est, 100 << 20))

    out = pl.pallas_call(
        cnn_fused_kernel,
        out_shape=jax.ShapeDtypeStruct((bp, op), jnp.float32),
        grid_spec=pltpu.PrefetchScalarGridSpec(
            num_scalar_prefetch=0,
            grid=(bp // tb,),
            in_specs=[pl.BlockSpec((tb, feat), lambda i: (i, 0))]   # batch-tiled acts
                     + [const(a) for a in weight_ops],
            out_specs=pl.BlockSpec((tb, op), lambda i: (i, 0)),
        ),
        compiler_params=pltpu.CompilerParams(**compiler_kwargs),
    )(x2d, *weight_ops)
    return out[:bsz, :out_size]


def init_cnn_params(key, input_size, output_size):
    """PyTorch-style U(-1/sqrt(fan_in), 1/sqrt(fan_in)) init, torch parameter layouts."""
    ks = jax.random.split(key, 8)

    def u(k, shape, fan_in):
        bound = 1.0 / np.sqrt(fan_in)
        return jax.random.uniform(k, shape, jnp.float32, -bound, bound)

    w1 = u(ks[0], (10, input_size, 5), input_size * 5)
    b1 = u(ks[1], (10,), input_size * 5)
    w2 = u(ks[2], (10, 10, 5), 10 * 5)
    b2 = u(ks[3], (10,), 10 * 5)
    w3 = u(ks[4], (10, 20), 20)
    b3 = u(ks[5], (10,), 20)
    w4 = u(ks[6], (output_size, 10), 10)
    b4 = u(ks[7], (output_size,), 10)
    return (w1, b1, w2, b2, w3, b3, w4, b4)


# ---------------- pure-JAX reference (independent formulation) ----------------
def _ref_conv1d(x, w, b):
    k = w.shape[-1]
    l_out = x.shape[-1] - k + 1
    cols = jnp.stack([x[:, :, dk:dk + l_out] for dk in range(k)], axis=-1)  # (B,Ci,Lo,K)
    return jnp.einsum('bilk,oik->bol', cols, w,
                      precision=jax.lax.Precision.HIGHEST) + b[None, :, None]


def _ref_maxpool1d(x, k=2):
    bsz, c, l = x.shape
    lp = l // k
    return jnp.max(x[:, :, :lp * k].reshape(bsz, c, lp, k), axis=-1)


def reference_forward(x, params):
    """Pure-JAX port of CNN.forward (inference mode: dropout == identity)."""
    w1, b1, w2, b2, w3, b3, w4, b4 = params
    h = jax.nn.relu(_ref_maxpool1d(_ref_conv1d(x, w1, b1)))
    h = jax.nn.relu(_ref_maxpool1d(_ref_conv1d(h, w2, b2)))     # conv2_drop: identity
    h = h.reshape(-1, w3.shape[1])                              # x.view(-1, 20)
    h = jax.nn.relu(h @ w3.T + b3)                              # fc1 + ReLU
    logits = h @ w4.T + b4                                      # F.dropout: identity; fc2
    return jax.nn.log_softmax(logits, axis=1)


if __name__ == "__main__":
    key = jax.random.PRNGKey(0)
    kx, kp = jax.random.split(key)

    # Shapes implied by the module: x.view(-1, 20) after two (conv k=5 -> pool 2) stages
    # forces seq_len = 20; INPUT_SIZE / OUTPUT_SIZE come from config (pick 4).
    # Batch 256 keeps the example small while still giving a >=2-step "parallel" grid.
    BATCH, INPUT_SIZE, SEQ_LEN, OUTPUT_SIZE = 256, 4, 20, 4

    x = jax.random.normal(kx, (BATCH, INPUT_SIZE, SEQ_LEN), jnp.float32)
    params = init_cnn_params(kp, INPUT_SIZE, OUTPUT_SIZE)
    prepared = prepare_cnn_params(params, SEQ_LEN)

    out = cnn_forward(x, prepared, out_size=OUTPUT_SIZE)
    out = jax.block_until_ready(out)

    with jax.default_matmul_precision("highest"):
        ref = jax.block_until_ready(reference_forward(x, params))

    assert out.shape == (BATCH, OUTPUT_SIZE), out.shape
    assert bool(jnp.all(jnp.isfinite(out)))
    assert jnp.allclose(out, ref, atol=2e-3, rtol=2e-3), float(jnp.max(jnp.abs(out - ref)))

    print("KERNEL_OK")
</pallas_src>

<mosaic_0001>
module attributes {stable_mosaic.version = 11 : i64} {
  func.func @cnn_fused_kernel(%arg0: i32, %arg1: memref<128x80xf32, #tpu.memory_space<vmem>>, %arg2: memref<80x256xf32, #tpu.memory_space<vmem>>, %arg3: memref<1x128xf32, #tpu.memory_space<vmem>>, %arg4: memref<128x256xf32, #tpu.memory_space<vmem>>, %arg5: memref<1x128xf32, #tpu.memory_space<vmem>>, %arg6: memref<128x128xf32, #tpu.memory_space<vmem>>, %arg7: memref<1x128xf32, #tpu.memory_space<vmem>>, %arg8: memref<128x128xf32, #tpu.memory_space<vmem>>, %arg9: memref<1x128xf32, #tpu.memory_space<vmem>>, %arg10: memref<128x128xf32, #tpu.memory_space<vmem>>) attributes {dimension_semantics = [#tpu.dimension_semantics<parallel>], iteration_bounds = array<i64: 2>, scalar_prefetch = 0 : i64, scratch_operands = 0 : i64, tpu.core_type = #tpu.core_type<tc>, window_params = [{transform_indices = @transform_0, window_bounds = array<i64: 128, 80>}, {pipeline_mode = #tpu.pipeline_mode<synchronous>, transform_indices = @transform_1, window_bounds = array<i64: 80, 256>}, {pipeline_mode = #tpu.pipeline_mode<synchronous>, transform_indices = @transform_2, window_bounds = array<i64: 1, 128>}, {pipeline_mode = #tpu.pipeline_mode<synchronous>, transform_indices = @transform_3, window_bounds = array<i64: 128, 256>}, {pipeline_mode = #tpu.pipeline_mode<synchronous>, transform_indices = @transform_4, window_bounds = array<i64: 1, 128>}, {pipeline_mode = #tpu.pipeline_mode<synchronous>, transform_indices = @transform_5, window_bounds = array<i64: 128, 128>}, {pipeline_mode = #tpu.pipeline_mode<synchronous>, transform_indices = @transform_6, window_bounds = array<i64: 1, 128>}, {pipeline_mode = #tpu.pipeline_mode<synchronous>, transform_indices = @transform_7, window_bounds = array<i64: 128, 128>}, {pipeline_mode = #tpu.pipeline_mode<synchronous>, transform_indices = @transform_8, window_bounds = array<i64: 1, 128>}, {transform_indices = @transform_9, window_bounds = array<i64: 128, 128>}]} {
    %c0 = arith.constant 0 : index
    %c0_0 = arith.constant 0 : index
    %0 = vector.load %arg1[%c0, %c0_0] : memref<128x80xf32, #tpu.memory_space<vmem>>, vector<128x80xf32>
    %c0_1 = arith.constant 0 : index
    %c0_2 = arith.constant 0 : index
    %1 = vector.load %arg2[%c0_1, %c0_2] : memref<80x256xf32, #tpu.memory_space<vmem>>, vector<80x256xf32>
    %cst = arith.constant dense<0.000000e+00> : vector<128x256xf32>
    %2 = tpu.matmul %0, %1, %cst {dimension_numbers = #tpu.dot_dimension_numbers<[1], [0], [0], [1], [0, 0, 1, 1], [], []>} : vector<128x80xf32>, vector<80x256xf32>, vector<128x256xf32> -> vector<128x256xf32>
    %3 = vector.extract_strided_slice %2 {offsets = [0, 0], sizes = [128, 128], strides = [1, 1]} : vector<128x256xf32> to vector<128x128xf32>
    %4 = vector.extract_strided_slice %2 {offsets = [0, 128], sizes = [128, 128], strides = [1, 1]} : vector<128x256xf32> to vector<128x128xf32>
    %5 = arith.maximumf %3, %4 : vector<128x128xf32>
    %c0_3 = arith.constant 0 : index
    %c0_4 = arith.constant 0 : index
    %6 = vector.load %arg3[%c0_3, %c0_4] : memref<1x128xf32, #tpu.memory_space<vmem>>, vector<1x128xf32>
    %7 = vector.broadcast %6 : vector<1x128xf32> to vector<128x128xf32>
    %8 = arith.addf %5, %7 : vector<128x128xf32>
    %cst_5 = arith.constant 0.000000e+00 : f32
    %9 = vector.broadcast %cst_5 : f32 to vector<128x128xf32>
    %10 = arith.maximumf %8, %9 : vector<128x128xf32>
    %c0_6 = arith.constant 0 : index
    %c0_7 = arith.constant 0 : index
    %11 = vector.load %arg4[%c0_6, %c0_7] : memref<128x256xf32, #tpu.memory_space<vmem>>, vector<128x256xf32>
    %cst_8 = arith.constant dense<0.000000e+00> : vector<128x256xf32>
    %12 = tpu.matmul %10, %11, %cst_8 {dimension_numbers = #tpu.dot_dimension_numbers<[1], [0], [0], [1], [0, 0, 1, 1], [], []>} : vector<128x128xf32>, vector<128x256xf32>, vector<128x256xf32> -> vector<128x256xf32>
    %13 = vector.extract_strided_slice %12 {offsets = [0, 0], sizes = [128, 128], strides = [1, 1]} : vector<128x256xf32> to vector<128x128xf32>
    %14 = vector.extract_strided_slice %12 {offsets = [0, 128], sizes = [128, 128], strides = [1, 1]} : vector<128x256xf32> to vector<128x128xf32>
    %15 = arith.maximumf %13, %14 : vector<128x128xf32>
    %c0_9 = arith.constant 0 : index
    %c0_10 = arith.constant 0 : index
    %16 = vector.load %arg5[%c0_9, %c0_10] : memref<1x128xf32, #tpu.memory_space<vmem>>, vector<1x128xf32>
    %17 = vector.broadcast %16 : vector<1x128xf32> to vector<128x128xf32>
    %18 = arith.addf %15, %17 : vector<128x128xf32>
    %cst_11 = arith.constant 0.000000e+00 : f32
    %19 = vector.broadcast %cst_11 : f32 to vector<128x128xf32>
    %20 = arith.maximumf %18, %19 : vector<128x128xf32>
    %c0_12 = arith.constant 0 : index
    %c0_13 = arith.constant 0 : index
    %21 = vector.load %arg6[%c0_12, %c0_13] : memref<128x128xf32, #tpu.memory_space<vmem>>, vector<128x128xf32>
    %cst_14 = arith.constant dense<0.000000e+00> : vector<128x128xf32>
    %22 = tpu.matmul %20, %21, %cst_14 {dimension_numbers = #tpu.dot_dimension_numbers<[1], [0], [0], [1], [0, 0, 1, 1], [], []>} : vector<128x128xf32>, vector<128x128xf32>, vector<128x128xf32> -> vector<128x128xf32>
    %c0_15 = arith.constant 0 : index
    %c0_16 = arith.constant 0 : index
    %23 = vector.load %arg7[%c0_15, %c0_16] : memref<1x128xf32, #tpu.memory_space<vmem>>, vector<1x128xf32>
    %24 = vector.broadcast %23 : vector<1x128xf32> to vector<128x128xf32>
    %25 = arith.addf %22, %24 : vector<128x128xf32>
    %cst_17 = arith.constant 0.000000e+00 : f32
    %26 = vector.broadcast %cst_17 : f32 to vector<128x128xf32>
    %27 = arith.maximumf %25, %26 : vector<128x128xf32>
    %c0_18 = arith.constant 0 : index
    %c0_19 = arith.constant 0 : index
    %28 = vector.load %arg8[%c0_18, %c0_19] : memref<128x128xf32, #tpu.memory_space<vmem>>, vector<128x128xf32>
    %cst_20 = arith.constant dense<0.000000e+00> : vector<128x128xf32>
    %29 = tpu.matmul %27, %28, %cst_20 {dimension_numbers = #tpu.dot_dimension_numbers<[1], [0], [0], [1], [0, 0, 1, 1], [], []>} : vector<128x128xf32>, vector<128x128xf32>, vector<128x128xf32> -> vector<128x128xf32>
    %c0_21 = arith.constant 0 : index
    %c0_22 = arith.constant 0 : index
    %30 = vector.load %arg9[%c0_21, %c0_22] : memref<1x128xf32, #tpu.memory_space<vmem>>, vector<1x128xf32>
    %31 = vector.broadcast %30 : vector<1x128xf32> to vector<128x128xf32>
    %32 = arith.addf %29, %31 : vector<128x128xf32>
    %cst_23 = arith.constant dense<0xFF800000> : vector<128xf32>
    %33 = vector.multi_reduction <maximumf>, %32, %cst_23 [1] : vector<128x128xf32> to vector<128xf32>
    %34 = vector.shape_cast %33 : vector<128xf32> to vector<128x1xf32>
    %35 = vector.broadcast %34 : vector<128x1xf32> to vector<128x128xf32>
    %36 = arith.subf %32, %35 : vector<128x128xf32>
    %37 = math.exp %36 : vector<128x128xf32>
    %cst_24 = arith.constant dense<0.000000e+00> : vector<128xf32>
    %38 = vector.multi_reduction <add>, %37, %cst_24 [1] : vector<128x128xf32> to vector<128xf32>
    %39 = vector.shape_cast %38 : vector<128xf32> to vector<128x1xf32>
    %40 = math.log %39 : vector<128x1xf32>
    %41 = vector.broadcast %40 : vector<128x1xf32> to vector<128x128xf32>
    %42 = arith.subf %36, %41 : vector<128x128xf32>
    %c0_25 = arith.constant 0 : index
    %c0_26 = arith.constant 0 : index
    %43 = vector.load %arg10[%c0_25, %c0_26] : memref<128x128xf32, #tpu.memory_space<vmem>>, vector<128x128xf32>
    tpu.vector_store %arg10[%c0_25, %c0_26], %42 {strides = array<i32>} : memref<128x128xf32, #tpu.memory_space<vmem>>, vector<128x128xf32>,
    return
  }
  func.func @transform_0(%arg0: i32) -> (i32, i32) {
    %c0_i32 = arith.constant 0 : i32
    %c0_i32_0 = arith.constant 0 : i32
    return %arg0, %c0_i32 : i32, i32
  }
  func.func @transform_1(%arg0: i32) -> (i32, i32) {
    %c0_i32 = arith.constant 0 : i32
    %c0_i32_0 = arith.constant 0 : i32
    %c0_i32_1 = arith.constant 0 : i32
    return %c0_i32, %c0_i32_0 : i32, i32
  }
  func.func @transform_2(%arg0: i32) -> (i32, i32) {
    %c0_i32 = arith.constant 0 : i32
    %c0_i32_0 = arith.constant 0 : i32
    %c0_i32_1 = arith.constant 0 : i32
    return %c0_i32, %c0_i32_0 : i32, i32
  }
  func.func @transform_3(%arg0: i32) -> (i32, i32) {
    %c0_i32 = arith.constant 0 : i32
    %c0_i32_0 = arith.constant 0 : i32
    %c0_i32_1 = arith.constant 0 : i32
    return %c0_i32, %c0_i32_0 : i32, i32
  }
  func.func @transform_4(%arg0: i32) -> (i32, i32) {
    %c0_i32 = arith.constant 0 : i32
    %c0_i32_0 = arith.constant 0 : i32
    %c0_i32_1 = arith.constant 0 : i32
    return %c0_i32, %c0_i32_0 : i32, i32
  }
  func.func @transform_5(%arg0: i32) -> (i32, i32) {
    %c0_i32 = arith.constant 0 : i32
    %c0_i32_0 = arith.constant 0 : i32
    %c0_i32_1 = arith.constant 0 : i32
    return %c0_i32, %c0_i32_0 : i32, i32
  }
  func.func @transform_6(%arg0: i32) -> (i32, i32) {
    %c0_i32 = arith.constant 0 : i32
    %c0_i32_0 = arith.constant 0 : i32
    %c0_i32_1 = arith.constant 0 : i32
    return %c0_i32, %c0_i32_0 : i32, i32
  }
  func.func @transform_7(%arg0: i32) -> (i32, i32) {
    %c0_i32 = arith.constant 0 : i32
    %c0_i32_0 = arith.constant 0 : i32
    %c0_i32_1 = arith.constant 0 : i32
    return %c0_i32, %c0_i32_0 : i32, i32
  }
  func.func @transform_8(%arg0: i32) -> (i32, i32) {
    %c0_i32 = arith.constant 0 : i32
    %c0_i32_0 = arith.constant 0 : i32
    %c0_i32_1 = arith.constant 0 : i32
    return %c0_i32, %c0_i32_0 : i32, i32
  }
  func.func @transform_9(%arg0: i32) -> (i32, i32) {
    %c0_i32 = arith.constant 0 : i32
    %c0_i32_0 = arith.constant 0 : i32
    return %arg0, %c0_i32 : i32, i32
  }
}

</mosaic_0001>

<bundles_post_ra>
// kernel: tpu_custom_call.1
= control target key start
LH: loop header
LB: loop body
LE: loop exit
PB: predicated region body
PF: predicated region fallthrough
CT: control target
= control target key end

     0   :  { %14 = vsyncpa [#allocation3], 0  ;;  %s2216_s0 = inlined_call_operand.vmem [shape: f32[256,80], index: 0, kind: input, shape index: {}]   ;;  %s2217_s1 = inlined_call_operand.vmem [shape: f32[80,256], index: 1, kind: input, shape index: {}]   ;;  %s2218_s2 = inlined_call_operand.vmem [shape: f32[1,128], index: 2, kind: input, shape index: {}]   ;;  %s2219_s3 = inlined_call_operand.vmem [shape: f32[128,256], index: 3, kind: input, shape index: {}]   ;;  %s2220_s4 = inlined_call_operand.vmem [shape: f32[1,128], index: 4, kind: input, shape index: {}]   ;;  %s2221_s5 = inlined_call_operand.hbm [shape: f32[128,128], index: 5, kind: input, shape index: {}]   ;;  %s2222_s6 = inlined_call_operand.vmem [shape: f32[1,128], index: 6, kind: input, shape index: {}]   ;;  %s2223_s7 = inlined_call_operand.hbm [shape: f32[128,128], index: 7, kind: input, shape index: {}]   ;;  %s2224_s8 = inlined_call_operand.vmem [shape: f32[1,128], index: 8, kind: input, shape index: {}]   ;;  %s2225_s9 = inlined_call_operand.hbm [shape: f32[256,128], index: 9, kind: output, shape index: {}]  }
   0x1   :  { %15 = vsyncpa [#allocation6], 0 }
   0x2   :  { %16 = vsyncpa [#allocation4], 0 }
   0x3   :  { %18 = vsyncpa [#allocation4 + $0x1], 0  ;;  %s1716_s30 = smov 0   ;;  %s1718_s10 = smov 0  }
   0x4   :  { %s1720_s11 = smov 0   ;;  %s1722_s12 = smov 0  }
   0x5 LB: > { %s1737_s13 = sadd.s32 4294967295, %s1658_s12   ;;  %s1311_s14 = sadd.s32 4294967294, %s1658_s12   ;;  %s1658_s12 = sphi %s1722_s12, %s2233_s12   ;;  %s1654_s11 = sphi %s1720_s11, %s2232_s11   ;;  %s1650_s10 = sphi %s1718_s10, %s2231_s10   ;;  %s1646_s30 = sphi %s1716_s30, %s2230_s30  }
   0x6   : > { %s1741_s15 = sadd.s32 1, %s1658_s12   ;;  %s225_s16 = sadd.s32 1, %s1654_s11 }
   0x7   : > { %s222_s17 = ssub.s32 %s1658_s12, %s1741_s15  ;;  %p235_p0 = scmp.ne.s32.totalorder %s1654_s11, %s1650_s10 }
   0x8   : > { %p223_p1 = scmp.eq.s32.totalorder %s222_s17, 0  ;;  %p236_p2 = scmp.eq.s32.totalorder %s1737_s13, 1 }
   0x9   : > { %p241_p3 = scmp.ne.s32.totalorder %s1650_s10, %s1646_s30  ;;  %p242_p4 = scmp.eq.s32.totalorder %s1311_s14, 1 }
   0xa   : > { %s1752_s18 = scalar_select %p223_p1, %s1654_s11, %s225_s16  }
   0xb   : > { %p1754_p5 = por %p236_p2, %p235_p0  ;;  %p1758_p6 = por %p242_p4, %p241_p3 }
   0xc   : > { %p1312_p7 = scmp.ge.s32.totalorder %s1658_s12, 1  ;;  %p249_p8 = scmp.lt.s32.totalorder %s1658_s12, 3 }
   0xd   : > { %p1417_p9 = scmp.eq.s32.totalorder %s1737_s13, 0  ;;  %s272_s24 = sshll.u32 %s2221_s5, 4  ;;  %s273_s24 = int_to_ptr.hbm [resolvable:$true] %s272_s24 }
   0xe   : > { %p1765_p10 = pnand %p1312_p7, %p249_p8  ;;  %s1660_s25 = smov [#allocation2]  }
   0xf   : > { %s274_s26 = sshll.u32 %s1660_s25, 4  ;;  %s289_s29 = sshll.u32 %s2223_s7, 4  ;;  %s275_s26 = int_to_ptr.vmem [resolvable:$true] %s274_s26  ;;  %s290_s29 = int_to_ptr.hbm [resolvable:$true] %s289_s29 }
  0x10   : > { %p1406_p11 = pneg %p1765_p10  ;;  %s1661_s14 = smov 128  }
  0x11   : > { %s1662_s16 = smov 8   ;;  %s1663_s17 = smov [#allocation5]  }
  0x12   : > { %p1407_p12 = pnand %p1417_p9, %p1406_p11  ;;  %s291_s22 = sshll.u32 %s1663_s17, 4  ;;  %s292_s22 = int_to_ptr.vmem [resolvable:$true] %s291_s22 }
  0x13   : > { %319 = sbr.rel (%p1765_p10) target bundleno = 959 (0x3bf), region = 56 }
  0x14   : > { %1409 = dma.hbm_to_vmem [thread:$0]  (!%p1407_p12), %s273_s24, 2048, %s275_s26, [#allocation3], %s1661_s14, %s1661_s14, %s1662_s16  }
  0x15   : > { %1412 = dma.hbm_to_vmem [thread:$0]  (!%p1407_p12), %s290_s29, 2048, %s292_s22, [#allocation6], %s1661_s14, %s1661_s14, %s1662_s16  }
  0x18   : > { %1633 = dma.done.wait (%p1417_p9), [#allocation3], 2048  }
  0x19   : > { %1635 = vsyncadd (%p1417_p9), [#allocation3], 4294965248 }
  0x1a   : > { %1637 = dma.done.wait (%p1417_p9), [#allocation6], 2048  }
  0x1b   : > { %1639 = vsyncadd (%p1417_p9), [#allocation6], 4294965248  ;;  %v402_v0 = vld [vmem:[%s2217_s1 + $0x90] sm:$0xff]  ;;  %v403_v1 = vld [vmem:[%s2217_s1 + $0x98] sm:$0xff]  ;;  %s1320_s28 = sshll.u32 %s1737_s13, 4  ;;  %vm404_vm0 = vcmask 654336  }
  0x1c   : > { %v400_v2 = vld [vmem:[%s2217_s1 + $0x80] sm:$0xff]  ;;  %459 = vmatpush.msra.mxu0 %v402_v0  ;;  %524 = vmatpush.msra.mxu1 %v403_v1  ;;  %v401_v3 = vld [vmem:[%s2217_s1 + $0x88] sm:$0xff]  ;;  %v398_v4 = vld [vmem:[%s2217_s1 + $0x70] sm:$0xff]  ;;  %p1808_p13 = scmp.lt.s32.totalorder %s1320_s28, 31  ;;  %s1359_s24 = sshll.u32 %s1737_s13, 7 }
  0x1d   : > { %v399_v5 = vld [vmem:[%s2217_s1 + $0x78] sm:$0xff]  ;;  %1370 = vmatpush.msra.mxu3 %v403_v1  ;;  %1360 = vmatpush.msra.mxu2 %v402_v0  ;;  %v396_v6 = vld [vmem:[%s2217_s1 + $0x60] sm:$0xff]  ;;  %v397_v7 = vld [vmem:[%s2217_s1 + $0x68] sm:$0xff]  ;;  %s1223_s23 = scalar_lea.hbm %s2225_s9, %s1359_s24  ;;  %s1608_s24 = scalar_lea.hbm %s2225_s9, 256 }
  0x1e   : > { %460 = vmatpush.msra.mxu0 %v400_v2  ;;  %525 = vmatpush.msra.mxu1 %v401_v3  ;;  %v394_v8 = vld [vmem:[%s2217_s1 + $0x50] sm:$0xff]  ;;  %v395_v9 = vld [vmem:[%s2217_s1 + $0x58] sm:$0xff]  ;;  %v392_v10 = vld [vmem:[%s2217_s1 + $0x40] sm:$0xff]  ;;  %s2235_s28 = smov (!%p1808_p13, %s1320_s28), 31  ;;  %s1226_s25 = sshll.u32 %s1223_s23, 4  ;;  %s1227_s25 = int_to_ptr.hbm [resolvable:$true] %s1226_s25 }
  0x1f   : > { %1371 = vmatpush.msra.mxu3 %v401_v3  ;;  %1361 = vmatpush.msra.mxu2 %v400_v2  ;;  %v393_v11 = vld [vmem:[%s2217_s1 + $0x48] sm:$0xff]  ;;  %v390_v12 = vld [vmem:[%s2217_s1 + $0x30] sm:$0xff]  ;;  %v391_v13 = vld [vmem:[%s2217_s1 + $0x38] sm:$0xff]  ;;  %s1321_s16 = sshll.u32 %s2235_s28, 3  ;;  %s358_s28 = sand.u32 1, %s1650_s10  }
  0x20   : > { %461 = vmatpush.msra.mxu0 %v398_v4  ;;  %526 = vmatpush.msra.mxu1 %v399_v5  ;;  %v388_v14 = vld [vmem:[%s2217_s1 + $0x20] sm:$0xff]  ;;  %v389_v15 = vld [vmem:[%s2217_s1 + $0x28] sm:$0xff]  ;;  %v386_v16 = vld [vmem:[%s2217_s1 + $0x10] sm:$0xff]  ;;  %s1853_s14 = scalar_lea.vmem %s2216_s0, %s1321_s16  ;;  %s1319_s29 = sshll.u32 %s358_s28, 7 }
  0x21   : > { %1372 = vmatpush.msra.mxu3 %v399_v5  ;;  %1362 = vmatpush.msra.mxu2 %v398_v4  ;;  %v387_v17 = vld [vmem:[%s2217_s1 + $0x18] sm:$0xff]  ;;  %v384_v18 = vld [vmem:[%s2217_s1] sm:$0xff]  ;;  %v385_v19 = vld [vmem:[%s2217_s1 + $0x8] sm:$0xff]  ;;  %s2149_s17 = scalar_lea.vmem [#allocation7], %s1319_s29  ;;  %s1212_s21 = scalar_lea.sflag [#allocation4], %s358_s28 }
  0x22   : > { %462 = vmatpush.msra.mxu0 %v396_v6  ;;  %527 = vmatpush.msra.mxu1 %v397_v7  ;;  %v368_v20 = vld [vmem:[%s1853_s14] sm:$0xff]  ;;  %v369_v21 = vld [vmem:[%s1853_s14 + $0x8] sm:$0xff]  ;;  %v370_v22 = vld [vmem:[%s1853_s14 + $0x10] sm:$0xff]  ;;  %s1224_s16 = sshll.u32 %s2149_s17, 4  ;;  %s1602_s26 = sshra.s32 %s1227_s25, 4  ;;  %s1225_s16 = int_to_ptr.vmem [resolvable:$true] %s1224_s16  ;;  %s1603_s26 = int_to_ptr.hbm [resolvable:$true] %s1602_s26 }
  0x23   : > { %1373 = vmatpush.msra.mxu3 %v397_v7  ;;  %1363 = vmatpush.msra.mxu2 %v396_v6  ;;  %v371_v23 = vld [vmem:[%s1853_s14 + $0x18] sm:$0xff]  ;;  %v1874_v24 = vld [vmem:[%s1853_s14 + $0x40] sm:$0xff]  ;;  %v377_v26 = vld [vmem:[%s1853_s14 + $0x48] sm:$0xff]  ;;  %s1604_s13 = scalar_lea.hbm %s1603_s26, 128  ;;  %p1609_p3 = scmp.lt.s32.totalorder %s1603_s26, %s2225_s9 }
  0x24   : > { %463 = vmatpush.msra.mxu0 %v394_v8  ;;  %528 = vmatpush.msra.mxu1 %v395_v9  ;;  %v372_v25 = vld [vmem:[%s1853_s14 + $0x20] sm:$0xff]  ;;  %v666_v27 = vld [vmem:[%s2219_s3 + $0xf8] sm:$0xff]  ;;  %v664_v28 = vld [vmem:[%s2219_s3 + $0xe8] sm:$0xff]  ;;  %p1605_p0 = scmp.ne.s32.totalorder %s1603_s26, %s1604_s13  ;;  %p1610_p4 = scmp.lt.s32.totalorder %s1608_s24, %s1604_s13 }
  0x25   : > { %1374 = vmatpush.msra.mxu3 %v395_v9  ;;  %1364 = vmatpush.msra.mxu2 %v394_v8  ;;  %v665_v29 = vld [vmem:[%s2219_s3 + $0xf0] sm:$0xff]  ;;  %v663_v30 = vld [vmem:[%s2219_s3 + $0xe0] sm:$0xff]  ;;  %v662_v31 = vld [vmem:[%s2219_s3 + $0xd8] sm:$0xff] }
  0x26   : > { %464 = vmatpush.msra.mxu0 %v392_v10  ;;  %529 = vmatpush.msra.mxu1 %v393_v11  ;;  %v661_v32 = vld [vmem:[%s2219_s3 + $0xd0] sm:$0xff]  ;;  %v373_v33 = vld [vmem:[%s1853_s14 + $0x28] sm:$0xff]  ;;  %v659_v36 = vld [vmem:[%s2219_s3 + $0xc0] sm:$0xff]  ;;  %p1606_p1 = pnand %p1605_p0, %p1754_p5  ;;  %p1611_p7 = por %p1610_p4, %p1609_p3 }
  0x27   : > { %1375 = vmatpush.msra.mxu3 %v393_v11  ;;  %1365 = vmatpush.msra.mxu2 %v392_v10  ;;  %v378_v34 = vld [vmem:[%s1853_s14 + $0x50] sm:$0xff]  ;;  %v660_v35 = vld [vmem:[%s2219_s3 + $0xc8] sm:$0xff]  ;;  %v658_v37 = vld [vmem:[%s2219_s3 + $0xb8] sm:$0xff] }
  0x28   : > { %465 = vmatpush.msra.mxu0 %v390_v12  ;;  %530 = vmatpush.msra.mxu1 %v391_v13  ;;  %v657_v38 = vld [vmem:[%s2219_s3 + $0xb0] sm:$0xff]  ;;  %v656_v39 = vld [vmem:[%s2219_s3 + $0xa8] sm:$0xff]  ;;  %v655_v40 = vld [vmem:[%s2219_s3 + $0xa0] sm:$0xff]  ;;  %p1607_p2 = pneg %p1606_p1 }
  0x29   : > { %1376 = vmatpush.msra.mxu3 %v391_v13  ;;  %1366 = vmatpush.msra.mxu2 %v390_v12  ;;  %v374_v41 = vld [vmem:[%s1853_s14 + $0x30] sm:$0xff]  ;;  %v379_v42 = vld [vmem:[%s1853_s14 + $0x58] sm:$0xff]  ;;  %v652_v45 = vld [vmem:[%s2219_s3 + $0x88] sm:$0xff] }
  0x2a   : > { %466 = vmatpush.msra.mxu0 %v388_v14  ;;  %531 = vmatpush.msra.mxu1 %v389_v15  ;;  %v654_v43 = vld [vmem:[%s2219_s3 + $0x98] sm:$0xff]  ;;  %v653_v44 = vld [vmem:[%s2219_s3 + $0x90] sm:$0xff]  ;;  %v651_v46 = vld [vmem:[%s2219_s3 + $0x80] sm:$0xff]  ;;  %p1612_p8 = pnand %p1611_p7, %p1607_p2 }
  0x2b   : > { %1377 = vmatpush.msra.mxu3 %v389_v15  ;;  %1367 = vmatpush.msra.mxu2 %v388_v14  ;;  %v650_v47 = vld [vmem:[%s2219_s3 + $0x78] sm:$0xff]  ;;  %v649_v48 = vld [vmem:[%s2219_s3 + $0x70] sm:$0xff]  ;;  %v380_v50 = vld [vmem:[%s1853_s14 + $0x60] sm:$0xff] }
  0x2c   : > { %467 = vmatpush.msra.mxu0 %v386_v16  ;;  %532 = vmatpush.msra.mxu1 %v387_v17  ;;  %v375_v49 = vld [vmem:[%s1853_s14 + $0x38] sm:$0xff]  ;;  %v648_v51 = vld [vmem:[%s2219_s3 + $0x68] sm:$0xff]  ;;  %v647_v52 = vld [vmem:[%s2219_s3 + $0x60] sm:$0xff] }
  0x2d   : > { %1378 = vmatpush.msra.mxu3 %v387_v17  ;;  %1368 = vmatpush.msra.mxu2 %v386_v16  ;;  %v646_v53 = vld [vmem:[%s2219_s3 + $0x58] sm:$0xff]  ;;  %v645_v54 = vld [vmem:[%s2219_s3 + $0x50] sm:$0xff]  ;;  %v644_v55 = vld [vmem:[%s2219_s3 + $0x48] sm:$0xff] }
  0x2e   : > { %468 = vmatpush.msra.mxu0 %v384_v18  ;;  %533 = vmatpush.msra.mxu1 %v385_v19  ;;  %v643_v56 = vld [vmem:[%s2219_s3 + $0x40] sm:$0xff]  ;;  %v642_v57 = vld [vmem:[%s2219_s3 + $0x38] sm:$0xff]  ;;  %v381_v58 = vld [vmem:[%s1853_s14 + $0x68] sm:$0xff] }
  0x2f   : > { %1322 = vmatmul.msk.f32.vlgmr.msra.gmra.mxu0 %vm404_vm0, %v368_v20  ;;  %1338 = vmatmul.msk.f32.vlgmr.msra.gmra.mxu1 %vm404_vm0, %v368_v20  ;;  %v641_v59 = vld [vmem:[%s2219_s3 + $0x30] sm:$0xff]  ;;  %v640_v60 = vld [vmem:[%s2219_s3 + $0x28] sm:$0xff]  ;;  %v639_v61 = vld [vmem:[%s2219_s3 + $0x20] sm:$0xff] }
  0x30   : > { %1379 = vmatpush.msra.mxu3 %v385_v19  ;;  %1369 = vmatpush.msra.mxu2 %v384_v18  ;;  %v638_v62 = vld [vmem:[%s2219_s3 + $0x18] sm:$0xff]  ;;  %v382_v63 = vld [vmem:[%s1853_s14 + $0x70] sm:$0xff]  ;;  %v636_v2 = vld [vmem:[%s2219_s3 + $0x8] sm:$0xff] }
  0x31   : > { %1346 = vmatmul.msk.f32.vlgmr.msra.gmra.mxu3 %vm404_vm0, %v1874_v24  ;;  %1331 = vmatmul.msk.f32.vlgmr.msra.gmra.mxu2 %vm404_vm0, %v377_v26  ;;  %v383_v0 = vld [vmem:[%s1853_s14 + $0x78] sm:$0xff]  ;;  %v637_v1 = vld [vmem:[%s2219_s3 + $0x10] sm:$0xff]  ;;  %v635_v3 = vld [vmem:[%s2219_s3] sm:$0xff] }
  0x32   : > { %732 = vmatpush.msrb.mxu3 %v666_v27  ;;  %667 = vmatpush.msrb.mxu2 %v665_v29  ;;  %v2012_v4 = vld [vmem:[%s2218_s2] ss:$0 sm:$0xff] }
  0x34   : > { %733 = vmatpush.msrb.mxu3 %v664_v28  ;;  %668 = vmatpush.msrb.mxu2 %v663_v30 }
  0x36   : > { %734 = vmatpush.msrb.mxu3 %v662_v31  ;;  %669 = vmatpush.msrb.mxu2 %v661_v32 }
  0x37   : > { %1323 = vmatmul.msk.f32.gmra.mxu0 %vm404_vm0, %v369_v21  ;;  %1339 = vmatmul.msk.f32.gmra.mxu1 %vm404_vm0, %v369_v21 }
  0x38   : > { %735 = vmatpush.msrb.mxu3 %v660_v35  ;;  %670 = vmatpush.msrb.mxu2 %v659_v36  ;;  %v864_v36 = vld [vmem:[#allocation2 + $0x78] sm:$0xff] }
  0x39   : > { %1347 = vmatmul.msk.f32.gmra.mxu3 %vm404_vm0, %v377_v26  ;;  %1332 = vmatmul.msk.f32.gmra.mxu2 %vm404_vm0, %v378_v34 }
  0x3a   : > { %736 = vmatpush.msrb.mxu3 %v658_v37  ;;  %671 = vmatpush.msrb.mxu2 %v657_v38  ;;  %v863_v37 = vld [vmem:[#allocation2 + $0x70] sm:$0xff] }
  0x3b   : > { %869 = vmatpush.msrb.mxu0 %v864_v36 }
  0x3c   : > { %737 = vmatpush.msrb.mxu3 %v656_v39  ;;  %672 = vmatpush.msrb.mxu2 %v655_v40 }
  0x3d   : > { %870 = vmatpush.msrb.mxu0 %v863_v37 }
  0x3e   : > { %738 = vmatpush.msrb.mxu3 %v654_v43  ;;  %673 = vmatpush.msrb.mxu2 %v653_v44 }
  0x3f   : > { %1324 = vmatmul.msk.f32.gmra.mxu0 %vm404_vm0, %v370_v22  ;;  %1340 = vmatmul.msk.f32.gmra.mxu1 %vm404_vm0, %v370_v22 }
  0x40   : > { %739 = vmatpush.msrb.mxu3 %v652_v45  ;;  %674 = vmatpush.msrb.mxu2 %v651_v46  ;;  %v862_v45 = vld [vmem:[#allocation2 + $0x68] sm:$0xff]  ;;  %v861_v46 = vld [vmem:[#allocation2 + $0x60] sm:$0xff] }
  0x41   : > { %1348 = vmatmul.msk.f32.gmra.mxu3 %vm404_vm0, %v378_v34  ;;  %1333 = vmatmul.msk.f32.gmra.mxu2 %vm404_vm0, %v379_v42 }
  0x42   : > { %740 = vmatpush.msrb.mxu3 %v650_v47  ;;  %675 = vmatpush.msrb.mxu2 %v649_v48 }
  0x43   : > { %871 = vmatpush.msrb.mxu0 %v862_v45 }
  0x44   : > { %741 = vmatpush.msrb.mxu3 %v648_v51  ;;  %676 = vmatpush.msrb.mxu2 %v647_v52 }
  0x45   : > { %872 = vmatpush.msrb.mxu0 %v861_v46 }
  0x46   : > { %742 = vmatpush.msrb.mxu3 %v646_v53  ;;  %677 = vmatpush.msrb.mxu2 %v645_v54  ;;  %v860_v54 = vld [vmem:[#allocation2 + $0x58] sm:$0xff] }
  0x47   : > { %1325 = vmatmul.msk.f32.gmra.mxu0 %vm404_vm0, %v371_v23  ;;  %1341 = vmatmul.msk.f32.gmra.mxu1 %vm404_vm0, %v371_v23 }
  0x48   : > { %743 = vmatpush.msrb.mxu3 %v644_v55  ;;  %678 = vmatpush.msrb.mxu2 %v643_v56  ;;  %v859_v55 = vld [vmem:[#allocation2 + $0x50] sm:$0xff] }
  0x49   : > { %1349 = vmatmul.msk.f32.gmra.mxu3 %vm404_vm0, %v379_v42  ;;  %1334 = vmatmul.msk.f32.gmra.mxu2 %vm404_vm0, %v380_v50 }
  0x4a   : > { %744 = vmatpush.msrb.mxu3 %v642_v57  ;;  %679 = vmatpush.msrb.mxu2 %v641_v59 }
  0x4b   : > { %873 = vmatpush.msrb.mxu0 %v860_v54 }
  0x4c   : > { %745 = vmatpush.msrb.mxu3 %v640_v60  ;;  %680 = vmatpush.msrb.mxu2 %v639_v61 }
  0x4d   : > { %874 = vmatpush.msrb.mxu0 %v859_v55 }
  0x4e   : > { %746 = vmatpush.msrb.mxu3 %v638_v62  ;;  %681 = vmatpush.msrb.mxu2 %v637_v1  ;;  %v858_v62 = vld [vmem:[#allocation2 + $0x48] sm:$0xff] }
  0x4f   : > { %1326 = vmatmul.msk.f32.gmra.mxu0 %vm404_vm0, %v372_v25  ;;  %1342 = vmatmul.msk.f32.gmra.mxu1 %vm404_vm0, %v372_v25 }
  0x50   : > { %747 = vmatpush.msrb.mxu3 %v636_v2  ;;  %682 = vmatpush.msrb.mxu2 %v635_v3 }
  0x51   : > { %1350 = vmatmul.msk.f32.gmra.mxu3 %vm404_vm0, %v380_v50  ;;  %1335 = vmatmul.msk.f32.gmra.mxu2 %vm404_vm0, %v381_v58 }
  0x52   : > { %1380 = vmatpush.msra.mxu2 %v864_v36  ;;  %875 = vmatpush.msrb.mxu0 %v858_v62 }
  0x54   : > { %1381 = vmatpush.msra.mxu2 %v863_v37 }
  0x56   : > { %1382 = vmatpush.msra.mxu2 %v862_v45 }
  0x57   : > { %1327 = vmatmul.msk.f32.gmra.mxu0 %vm404_vm0, %v373_v33  ;;  %1343 = vmatmul.msk.f32.gmra.mxu1 %vm404_vm0, %v373_v33 }
  0x58   : > { %1383 = vmatpush.msra.mxu2 %v861_v46 }
  0x59   : > { %1351 = vmatmul.msk.f32.gmra.mxu3 %vm404_vm0, %v381_v58  ;;  %1336 = vmatmul.msk.f32.gmra.mxu2 %vm404_vm0, %v382_v63 }
  0x5a   : > { %1384 = vmatpush.msra.mxu2 %v860_v54 }
  0x5c   : > { %1385 = vmatpush.msra.mxu2 %v859_v55 }
  0x5e   : > { %1386 = vmatpush.msra.mxu2 %v858_v62 }
  0x5f   : > { %1328 = vmatmul.msk.f32.gmra.mxu0 %vm404_vm0, %v374_v41  ;;  %1344 = vmatmul.msk.f32.gmra.mxu1 %vm404_vm0, %v374_v41 }
  0x61   : > { %1352 = vmatmul.msk.f32.gmra.mxu3 %vm404_vm0, %v382_v63  ;;  %1337 = vmatmul.msk.f32.gmra.mxu2 %vm404_vm0, %v383_v0 }
  0x67   : > { %1329 = vmatmul.msk.f32.gmra.mxu0 %vm404_vm0, %v375_v49  ;;  %1345 = vmatmul.msk.f32.gmra.mxu1 %vm404_vm0, %v375_v49 }
  0x69   : > { %1353 = vmatmul.msk.f32.gmra.mxu3 %vm404_vm0, %v383_v0 }
  0x6f   : > { %1330 = vmatmul.msk.f32.gmra.mxu0 %vm404_vm0, %v1874_v24 }
  0xac   : > { %v470_v5 = vpop.f32.mrf.mxu0  ;;  %v535_v6 = vpop.f32.mrf.mxu1 }
  0xad   : > { %v583_v7 = vmax.f32 %v470_v5, %v535_v6  ;;  %v857_v5 = vld [vmem:[#allocation2 + $0x40] sm:$0xff]  ;;  %v856_v6 = vld [vmem:[#allocation2 + $0x38] sm:$0xff] }
  0xae   : > { %876 = vmatpush.msrb.mxu0 %v857_v5  ;;  %1387 = vmatpush.msra.mxu2 %v857_v5  ;;  %v965_v5 = vld [vmem:[#allocation5 + $0x78] sm:$0xff] }
  0xaf   : > { %v603_v8 = vadd.f32 %v2012_v4, %v583_v7  ;;  %970 = vmatpush.msrb.mxu1 %v965_v5 }
  0xb0   : > { %877 = vmatpush.msrb.mxu0 %v856_v6  ;;  %1388 = vmatpush.msra.mxu2 %v856_v6 }
  0xb1   : > { %v619_v9 = vmax.f32 %v603_v8, 0.0 }
  0xb3   : > { %683 = vmatmul.f32.vlgmr.msrb.gmra.mxu2 %v619_v9  ;;  %748 = vmatmul.f32.vlgmr.msrb.gmra.mxu3 %v619_v9 }
  0xb4   : > { %v473_v10 = vpop.f32.mrf.mxu0  ;;  %v538_v11 = vpop.f32.mrf.mxu1 }
  0xb5   : > { %v584_v12 = vmax.f32 %v473_v10, %v538_v11  ;;  %v559_v33 = vpop.f32.mrf.mxu3  ;;  %v497_v42 = vpop.f32.mrf.mxu2 }
  0xb7   : > { %v604_v13 = vadd.f32 %v2012_v4, %v584_v12  ;;  %v855_v12 = vld [vmem:[#allocation2 + $0x30] sm:$0xff] }
  0xb8   : > { %878 = vmatpush.msrb.mxu0 %v855_v12  ;;  %1389 = vmatpush.msra.mxu2 %v855_v12  ;;  %v963_v12 = vld [vmem:[#allocation5 + $0x68] sm:$0xff] }
  0xb9   : > { %v620_v14 = vmax.f32 %v604_v13, 0.0  ;;  %v854_v13 = vld [vmem:[#allocation2 + $0x28] sm:$0xff] }
  0xba   : > { %879 = vmatpush.msrb.mxu0 %v854_v13  ;;  %1390 = vmatpush.msra.mxu2 %v854_v13 }
  0xbb   : > { %686 = vmatmul.f32.gmra.mxu2 %v620_v14  ;;  %751 = vmatmul.f32.gmra.mxu3 %v620_v14 }
  0xbc   : > { %v476_v15 = vpop.f32.mrf.mxu0  ;;  %v541_v16 = vpop.f32.mrf.mxu1 }
  0xbd   : > { %v585_v17 = vmax.f32 %v476_v15, %v541_v16  ;;  %v562_v43 = vpop.f32.mrf.mxu3  ;;  %v500_v52 = vpop.f32.mrf.mxu2 }
  0xbe   : > { %v592_v59 = vmax.f32 %v497_v42, %v562_v43 }
  0xbf   : > { %v605_v18 = vadd.f32 %v2012_v4, %v585_v17 }
  0xc0   : > { %v612_v61 = vadd.f32 %v2012_v4, %v592_v59 }
  0xc1   : > { %v621_v19 = vmax.f32 %v605_v18, 0.0 }
  0xc2   : > { %v628_v1 = vmax.f32 %v612_v61, 0.0 }
  0xc3   : > { %689 = vmatmul.f32.gmra.mxu2 %v621_v19  ;;  %754 = vmatmul.f32.gmra.mxu3 %v621_v19  ;;  %v853_v19 = vld [vmem:[#allocation2 + $0x20] sm:$0xff] }
  0xc4   : > { %v479_v20 = vpop.f32.mrf.mxu0  ;;  %v544_v21 = vpop.f32.mrf.mxu1  ;;  %880 = vmatpush.msrb.mxu0 %v853_v19  ;;  %1391 = vmatpush.msra.mxu2 %v853_v19  ;;  %v961_v19 = vld [vmem:[#allocation5 + $0x58] sm:$0xff] }
  0xc5   : > { %v586_v22 = vmax.f32 %v479_v20, %v544_v21  ;;  %v565_v53 = vpop.f32.mrf.mxu3  ;;  %v503_v63 = vpop.f32.mrf.mxu2  ;;  %v852_v20 = vld [vmem:[#allocation2 + $0x18] sm:$0xff] }
  0xc6   : > { %v593_v2 = vmax.f32 %v500_v52, %v565_v53  ;;  %881 = vmatpush.msrb.mxu0 %v852_v20  ;;  %1392 = vmatpush.msra.mxu2 %v852_v20 }
  0xc7   : > { %v606_v23 = vadd.f32 %v2012_v4, %v586_v22 }
  0xc8   : > { %v613_v3 = vadd.f32 %v2012_v4, %v593_v2 }
  0xc9   : > { %v622_v24 = vmax.f32 %v606_v23, 0.0 }
  0xca   : > { %v629_v9 = vmax.f32 %v613_v3, 0.0 }
  0xcb   : > { %692 = vmatmul.f32.gmra.mxu2 %v622_v24  ;;  %757 = vmatmul.f32.gmra.mxu3 %v622_v24 }
  0xcc   : > { %v482_v25 = vpop.f32.mrf.mxu0  ;;  %v547_v26 = vpop.f32.mrf.mxu1 }
  0xcd   : > { %v587_v27 = vmax.f32 %v482_v25, %v547_v26  ;;  %v568_v0 = vpop.f32.mrf.mxu3  ;;  %v506_v7 = vpop.f32.mrf.mxu2 }
  0xce   : > { %v594_v10 = vmax.f32 %v503_v63, %v568_v0 }
  0xcf   : > { %v607_v28 = vadd.f32 %v2012_v4, %v587_v27 }
  0xd0   : > { %v614_v11 = vadd.f32 %v2012_v4, %v594_v10 }
  0xd1   : > { %v623_v29 = vmax.f32 %v607_v28, 0.0  ;;  %v851_v28 = vld [vmem:[#allocation2 + $0x10] sm:$0xff] }
  0xd2   : > { %v630_v14 = vmax.f32 %v614_v11, 0.0  ;;  %882 = vmatpush.msrb.mxu0 %v851_v28  ;;  %1393 = vmatpush.msra.mxu2 %v851_v28 }
  0xd3   : > { %695 = vmatmul.f32.gmra.mxu2 %v623_v29  ;;  %760 = vmatmul.f32.gmra.mxu3 %v623_v29  ;;  %v850_v29 = vld [vmem:[#allocation2 + $0x8] sm:$0xff] }
  0xd4   : > { %v485_v30 = vpop.f32.mrf.mxu0  ;;  %v550_v31 = vpop.f32.mrf.mxu1  ;;  %883 = vmatpush.msrb.mxu0 %v850_v29  ;;  %1394 = vmatpush.msra.mxu2 %v850_v29 }
  0xd5   : > { %v588_v32 = vmax.f32 %v485_v30, %v550_v31  ;;  %v571_v8 = vpop.f32.mrf.mxu3  ;;  %v509_v16 = vpop.f32.mrf.mxu2  ;;  %v849_v31 = vld [vmem:[#allocation2] sm:$0xff] }
  0xd6   : > { %v595_v15 = vmax.f32 %v506_v7, %v571_v8  ;;  %884 = vmatpush.msrb.mxu0 %v849_v31  ;;  %1395 = vmatpush.msra.mxu2 %v849_v31 }
  0xd7   : > { %v608_v34 = vadd.f32 %v2012_v4, %v588_v32 }
  0xd8   : > { %v615_v18 = vadd.f32 %v2012_v4, %v595_v15 }
  0xd9   : > { %v624_v35 = vmax.f32 %v608_v34, 0.0 }
  0xda   : > { %v631_v21 = vmax.f32 %v615_v18, 0.0 }
  0xdb   : > { %698 = vmatmul.f32.gmra.mxu2 %v624_v35  ;;  %763 = vmatmul.f32.gmra.mxu3 %v624_v35 }
  0xdc   : > { %v488_v38 = vpop.f32.mrf.mxu0  ;;  %v553_v39 = vpop.f32.mrf.mxu1 }
  0xdd   : > { %v589_v40 = vmax.f32 %v488_v38, %v553_v39  ;;  %v574_v17 = vpop.f32.mrf.mxu3  ;;  %v512_v23 = vpop.f32.mrf.mxu2  ;;  %v2033_v38 = vld [vmem:[%s2220_s4] ss:$0 sm:$0xff] }
  0xde   : > { %v596_v22 = vmax.f32 %v509_v16, %v574_v17  ;;  %v962_v16 = vld [vmem:[#allocation5 + $0x60] sm:$0xff] }
  0xdf   : > { %v609_v41 = vadd.f32 %v2012_v4, %v589_v40 }
  0xe0   : > { %v616_v25 = vadd.f32 %v2012_v4, %v596_v22 }
  0xe1   : > { %v625_v44 = vmax.f32 %v609_v41, 0.0 }
  0xe2   : > { %v632_v26 = vmax.f32 %v616_v25, 0.0 }
  0xe3   : > { %701 = vmatmul.f32.gmra.mxu2 %v625_v44  ;;  %766 = vmatmul.f32.gmra.mxu3 %v625_v44 }
  0xe4   : > { %v491_v47 = vpop.f32.mrf.mxu0  ;;  %v556_v48 = vpop.f32.mrf.mxu1 }
  0xe5   : > { %v590_v49 = vmax.f32 %v491_v47, %v556_v48  ;;  %v577_v24 = vpop.f32.mrf.mxu3  ;;  %v515_v32 = vpop.f32.mrf.mxu2 }
  0xe6   : > { %v597_v27 = vmax.f32 %v512_v23, %v577_v24  ;;  %v960_v23 = vld [vmem:[#allocation5 + $0x50] sm:$0xff] }
  0xe7   : > { %v610_v50 = vadd.f32 %v2012_v4, %v590_v49 }
  0xe8   : > { %v617_v30 = vadd.f32 %v2012_v4, %v597_v27 }
  0xe9   : > { %v626_v51 = vmax.f32 %v610_v50, 0.0 }
  0xea   : > { %v633_v34 = vmax.f32 %v617_v30, 0.0  ;;  %v958_v30 = vld [vmem:[#allocation5 + $0x40] sm:$0xff] }
  0xeb   : > { %704 = vmatmul.f32.gmra.mxu2 %v626_v51  ;;  %769 = vmatmul.f32.gmra.mxu3 %v626_v51 }
  0xec   : > { %v494_v56 = vpop.f32.mrf.mxu0 }
  0xed   : > { %v591_v57 = vmax.f32 %v494_v56, %v559_v33  ;;  %v580_v33 = vpop.f32.mrf.mxu3 }
  0xee   : > { %v598_v35 = vmax.f32 %v515_v32, %v580_v33  ;;  %v957_v33 = vld [vmem:[#allocation5 + $0x38] sm:$0xff] }
  0xef   : > { %v611_v58 = vadd.f32 %v2012_v4, %v591_v57 }
  0xf0   : > { %v618_v36 = vadd.f32 %v2012_v4, %v598_v35 }
  0xf1   : > { %v627_v60 = vmax.f32 %v611_v58, 0.0 }
  0xf2   : > { %v634_v37 = vmax.f32 %v618_v36, 0.0 }
  0xf3   : > { %707 = vmatmul.f32.gmra.mxu2 %v627_v60  ;;  %772 = vmatmul.f32.gmra.mxu3 %v627_v60 }
  0xfb   : > { %710 = vmatmul.f32.gmra.mxu2 %v628_v1  ;;  %775 = vmatmul.f32.gmra.mxu3 %v628_v1 }
 0x103   : > { %713 = vmatmul.f32.gmra.mxu2 %v629_v9  ;;  %778 = vmatmul.f32.gmra.mxu3 %v629_v9  ;;  %v964_v9 = vld [vmem:[#allocation5 + $0x70] sm:$0xff] }
 0x104   : > { %971 = vmatpush.msrb.mxu1 %v964_v9 }
 0x106   : > { %972 = vmatpush.msrb.mxu1 %v963_v12 }
 0x108   : > { %973 = vmatpush.msrb.mxu1 %v962_v16 }
 0x10a   : > { %974 = vmatpush.msrb.mxu1 %v961_v19 }
 0x10b   : > { %716 = vmatmul.f32.gmra.mxu2 %v630_v14  ;;  %781 = vmatmul.f32.gmra.mxu3 %v630_v14 }
 0x10c   : > { %975 = vmatpush.msrb.mxu1 %v960_v23 }
 0x113   : > { %719 = vmatmul.f32.gmra.mxu2 %v631_v21  ;;  %784 = vmatmul.f32.gmra.mxu3 %v631_v21 }
 0x11b   : > { %722 = vmatmul.f32.gmra.mxu2 %v632_v26  ;;  %787 = vmatmul.f32.gmra.mxu3 %v632_v26  ;;  %v959_v26 = vld [vmem:[#allocation5 + $0x48] sm:$0xff] }
 0x11c   : > { %976 = vmatpush.msrb.mxu1 %v959_v26 }
 0x11e   : > { %977 = vmatpush.msrb.mxu1 %v958_v30 }
 0x120   : > { %978 = vmatpush.msrb.mxu1 %v957_v33 }
 0x123   : > { %725 = vmatmul.f32.gmra.mxu2 %v633_v34  ;;  %790 = vmatmul.f32.gmra.mxu3 %v633_v34 }
 0x12b   : > { %728 = vmatmul.f32.gmra.mxu2 %v634_v37  ;;  %793 = vmatmul.f32.gmra.mxu3 %v634_v37  ;;  %v956_v37 = vld [vmem:[#allocation5 + $0x30] sm:$0xff] }
 0x12c   : > { %979 = vmatpush.msrb.mxu1 %v956_v37 }
 0x136   : > { %v684_v39 = vpop.f32.mrf.mxu2  ;;  %v749_v40 = vpop.f32.mrf.mxu3 }
 0x137   : > { %v797_v41 = vmax.f32 %v684_v39, %v749_v40 }
 0x139   : > { %v817_v42 = vadd.f32 %v2033_v38, %v797_v41  ;;  %v955_v41 = vld [vmem:[#allocation5 + $0x28] sm:$0xff] }
 0x13a   : > { %980 = vmatpush.msrb.mxu1 %v955_v41 }
 0x13b   : > { %v833_v43 = vmax.f32 %v817_v42, 0.0 }
 0x13d   : > { %885 = vmatmul.f32.vlgmr.msrb.gmra.mxu0 %v833_v43 }
 0x13e   : > { %v687_v44 = vpop.f32.mrf.mxu2  ;;  %v752_v45 = vpop.f32.mrf.mxu3 }
 0x13f   : > { %v798_v46 = vmax.f32 %v687_v44, %v752_v45 }
 0x141   : > { %v818_v4 = vadd.f32 %v2033_v38, %v798_v46 }
 0x143   : > { %v834_v47 = vmax.f32 %v818_v4, 0.0  ;;  %v954_v4 = vld [vmem:[#allocation5 + $0x20] sm:$0xff] }
 0x144   : > { %981 = vmatpush.msrb.mxu1 %v954_v4 }
 0x145   : > { %888 = vmatmul.f32.gmra.mxu0 %v834_v47  ;;  %v953_v47 = vld [vmem:[#allocation5 + $0x18] sm:$0xff] }
 0x146   : > { %v690_v48 = vpop.f32.mrf.mxu2  ;;  %v755_v49 = vpop.f32.mrf.mxu3  ;;  %982 = vmatpush.msrb.mxu1 %v953_v47 }
 0x147   : > { %v799_v50 = vmax.f32 %v690_v48, %v755_v49  ;;  %v952_v48 = vld [vmem:[#allocation5 + $0x10] sm:$0xff] }
 0x148   : > { %983 = vmatpush.msrb.mxu1 %v952_v48 }
 0x149   : > { %v819_v51 = vadd.f32 %v2033_v38, %v799_v50 }
 0x14b   : > { %v835_v52 = vmax.f32 %v819_v51, 0.0 }
 0x14d   : > { %891 = vmatmul.f32.gmra.mxu0 %v835_v52 }
 0x14e   : > { %v693_v53 = vpop.f32.mrf.mxu2  ;;  %v758_v54 = vpop.f32.mrf.mxu3 }
 0x14f   : > { %v800_v55 = vmax.f32 %v693_v53, %v758_v54  ;;  %v951_v54 = vld [vmem:[#allocation5 + $0x8] sm:$0xff] }
 0x150   : > { %984 = vmatpush.msrb.mxu1 %v951_v54 }
 0x151   : > { %v820_v56 = vadd.f32 %v2033_v38, %v800_v55  ;;  %v950_v55 = vld [vmem:[#allocation5] sm:$0xff] }
 0x152   : > { %985 = vmatpush.msrb.mxu1 %v950_v55  ;;  %v1463_v55 = vld [vmem:[%s2224_s8] ss:$0 sm:$0xff] }
 0x153   : > { %v836_v57 = vmax.f32 %v820_v56, 0.0 }
 0x155   : > { %894 = vmatmul.f32.gmra.mxu0 %v836_v57 }
 0x156   : > { %v696_v58 = vpop.f32.mrf.mxu2  ;;  %v761_v59 = vpop.f32.mrf.mxu3 }
 0x157   : > { %v801_v60 = vmax.f32 %v696_v58, %v761_v59 }
 0x159   : > { %v821_v61 = vadd.f32 %v2033_v38, %v801_v60 }
 0x15b   : > { %v837_v62 = vmax.f32 %v821_v61, 0.0 }
 0x15d   : > { %897 = vmatmul.f32.gmra.mxu0 %v837_v62 }
 0x15e   : > { %v699_v63 = vpop.f32.mrf.mxu2  ;;  %v764_v0 = vpop.f32.mrf.mxu3 }
 0x15f   : > { %v802_v1 = vmax.f32 %v699_v63, %v764_v0 }
 0x161   : > { %v822_v2 = vadd.f32 %v2033_v38, %v802_v1 }
 0x163   : > { %v838_v3 = vmax.f32 %v822_v2, 0.0 }
 0x165   : > { %900 = vmatmul.f32.gmra.mxu0 %v838_v3 }
 0x166   : > { %v702_v6 = vpop.f32.mrf.mxu2  ;;  %v767_v7 = vpop.f32.mrf.mxu3 }
 0x167   : > { %v803_v8 = vmax.f32 %v702_v6, %v767_v7 }
 0x169   : > { %v823_v10 = vadd.f32 %v2033_v38, %v803_v8  ;;  %v1462_v8 = vld [vmem:[%s2222_s6] ss:$0 sm:$0xff] }
 0x16b   : > { %v839_v11 = vmax.f32 %v823_v10, 0.0 }
 0x16d   : > { %903 = vmatmul.f32.gmra.mxu0 %v839_v11 }
 0x16e   : > { %v705_v13 = vpop.f32.mrf.mxu2  ;;  %v770_v14 = vpop.f32.mrf.mxu3 }
 0x16f   : > { %v804_v15 = vmax.f32 %v705_v13, %v770_v14 }
 0x171   : > { %v824_v17 = vadd.f32 %v2033_v38, %v804_v15 }
 0x173   : > { %v840_v18 = vmax.f32 %v824_v17, 0.0 }
 0x175   : > { %906 = vmatmul.f32.gmra.mxu0 %v840_v18 }
 0x176   : > { %v708_v20 = vpop.f32.mrf.mxu2  ;;  %v773_v21 = vpop.f32.mrf.mxu3 }
 0x177   : > { %v805_v22 = vmax.f32 %v708_v20, %v773_v21 }
 0x179   : > { %v825_v24 = vadd.f32 %v2033_v38, %v805_v22 }
 0x17b   : > { %v841_v25 = vmax.f32 %v825_v24, 0.0 }
 0x17d   : > { %909 = vmatmul.f32.gmra.mxu0 %v841_v25 }
 0x17e   : > { %v711_v27 = vpop.f32.mrf.mxu2  ;;  %v776_v28 = vpop.f32.mrf.mxu3 }
 0x17f   : > { %v806_v29 = vmax.f32 %v711_v27, %v776_v28 }
 0x181   : > { %v826_v31 = vadd.f32 %v2033_v38, %v806_v29 }
 0x183   : > { %v842_v32 = vmax.f32 %v826_v31, 0.0 }
 0x185   : > { %912 = vmatmul.f32.gmra.mxu0 %v842_v32 }
 0x186   : > { %v714_v34 = vpop.f32.mrf.mxu2  ;;  %v779_v35 = vpop.f32.mrf.mxu3 }
 0x187   : > { %v807_v36 = vmax.f32 %v714_v34, %v779_v35 }
 0x189   : > { %v827_v39 = vadd.f32 %v2033_v38, %v807_v36 }
 0x18b   : > { %v843_v40 = vmax.f32 %v827_v39, 0.0 }
 0x18d   : > { %915 = vmatmul.f32.gmra.mxu0 %v843_v40 }
 0x18e   : > { %v717_v42 = vpop.f32.mrf.mxu2  ;;  %v782_v43 = vpop.f32.mrf.mxu3 }
 0x18f   : > { %v808_v44 = vmax.f32 %v717_v42, %v782_v43 }
 0x191   : > { %v828_v45 = vadd.f32 %v2033_v38, %v808_v44 }
 0x193   : > { %v844_v46 = vmax.f32 %v828_v45, 0.0 }
 0x195   : > { %918 = vmatmul.f32.gmra.mxu0 %v844_v46 }
 0x196   : > { %v720_v49 = vpop.f32.mrf.mxu2  ;;  %v785_v50 = vpop.f32.mrf.mxu3 }
 0x197   : > { %v809_v51 = vmax.f32 %v720_v49, %v785_v50 }
 0x199   : > { %v829_v52 = vadd.f32 %v2033_v38, %v809_v51 }
 0x19b   : > { %v845_v53 = vmax.f32 %v829_v52, 0.0 }
 0x19d   : > { %921 = vmatmul.f32.gmra.mxu0 %v845_v53 }
 0x19e   : > { %v723_v56 = vpop.f32.mrf.mxu2  ;;  %v788_v57 = vpop.f32.mrf.mxu3 }
 0x19f   : > { %v810_v58 = vmax.f32 %v723_v56, %v788_v57 }
 0x1a1   : > { %v830_v59 = vadd.f32 %v2033_v38, %v810_v58 }
 0x1a3   : > { %v846_v60 = vmax.f32 %v830_v59, 0.0 }
 0x1a5   : > { %924 = vmatmul.f32.gmra.mxu0 %v846_v60 }
 0x1a6   : > { %v726_v61 = vpop.f32.mrf.mxu2  ;;  %v791_v62 = vpop.f32.mrf.mxu3 }
 0x1a7   : > { %v811_v63 = vmax.f32 %v726_v61, %v791_v62 }
 0x1a9   : > { %v831_v0 = vadd.f32 %v2033_v38, %v811_v63 }
 0x1ab   : > { %v847_v1 = vmax.f32 %v831_v0, 0.0 }
 0x1ad   : > { %927 = vmatmul.f32.gmra.mxu0 %v847_v1 }
 0x1ae   : > { %v729_v2 = vpop.f32.mrf.mxu2  ;;  %v794_v3 = vpop.f32.mrf.mxu3 }
 0x1af   : > { %v812_v5 = vmax.f32 %v729_v2, %v794_v3 }
 0x1b1   : > { %v832_v6 = vadd.f32 %v2033_v38, %v812_v5 }
 0x1b3   : > { %v848_v7 = vmax.f32 %v832_v6, 0.0 }
 0x1b5   : > { %930 = vmatmul.f32.vlgmr.msra.gmra.mxu2 %v848_v7 }
 0x1ba   : > { %v886_v9 = vpop.f32.mrf.mxu0 }
 0x1bb   : > { %v887_v10 = vadd.f32 %v1462_v8, %v886_v9 }
 0x1bd   : > { %v934_v11 = vmax.f32 %v887_v10, 0.0 }
 0x1bf   : > { %986 = vmatmul.f32.vlgmr.msrb.gmra.mxu1 %v934_v11 }
 0x1c2   : > { %v889_v12 = vpop.f32.mrf.mxu0 }
 0x1c3   : > { %v890_v13 = vadd.f32 %v1462_v8, %v889_v12 }
 0x1c5   : > { %v935_v14 = vmax.f32 %v890_v13, 0.0 }
 0x1c7   : > { %989 = vmatmul.f32.gmra.mxu1 %v935_v14 }
 0x1ca   : > { %v892_v15 = vpop.f32.mrf.mxu0 }
 0x1cb   : > { %v893_v16 = vadd.f32 %v1462_v8, %v892_v15 }
 0x1cd   : > { %v936_v17 = vmax.f32 %v893_v16, 0.0 }
 0x1cf   : > { %992 = vmatmul.f32.gmra.mxu1 %v936_v17 }
 0x1d2   : > { %v895_v18 = vpop.f32.mrf.mxu0 }
 0x1d3   : > { %v896_v38 = vadd.f32 %v1462_v8, %v895_v18 }
 0x1d5   : > { %v937_v19 = vmax.f32 %v896_v38, 0.0 }
 0x1d7   : > { %995 = vmatmul.f32.gmra.mxu1 %v937_v19 }
 0x1da   : > { %v898_v20 = vpop.f32.mrf.mxu0 }
 0x1db   : > { %v899_v21 = vadd.f32 %v1462_v8, %v898_v20 }
 0x1dd   : > { %v938_v22 = vmax.f32 %v899_v21, 0.0 }
 0x1df   : > { %998 = vmatmul.f32.gmra.mxu1 %v938_v22 }
 0x1e2   : > { %v901_v23 = vpop.f32.mrf.mxu0 }
 0x1e3   : > { %v902_v24 = vadd.f32 %v1462_v8, %v901_v23 }
 0x1e5   : > { %v939_v25 = vmax.f32 %v902_v24, 0.0 }
 0x1e7   : > { %1001 = vmatmul.f32.gmra.mxu1 %v939_v25 }
 0x1ea   : > { %v904_v26 = vpop.f32.mrf.mxu0 }
 0x1eb   : > { %v905_v27 = vadd.f32 %v1462_v8, %v904_v26 }
 0x1ed   : > { %v940_v28 = vmax.f32 %v905_v27, 0.0 }
 0x1ef   : > { %1004 = vmatmul.f32.gmra.mxu1 %v940_v28 }
 0x1f2   : > { %v907_v29 = vpop.f32.mrf.mxu0 }
 0x1f3   : > { %v908_v30 = vadd.f32 %v1462_v8, %v907_v29 }
 0x1f5   : > { %v941_v31 = vmax.f32 %v908_v30, 0.0 }
 0x1f7   : > { %1007 = vmatmul.f32.gmra.mxu1 %v941_v31 }
 0x1fa   : > { %v910_v32 = vpop.f32.mrf.mxu0 }
 0x1fb   : > { %v911_v33 = vadd.f32 %v1462_v8, %v910_v32 }
 0x1fd   : > { %v942_v34 = vmax.f32 %v911_v33, 0.0 }
 0x1ff   : > { %1010 = vmatmul.f32.gmra.mxu1 %v942_v34 }
 0x202   : > { %v913_v35 = vpop.f32.mrf.mxu0 }
 0x203   : > { %v914_v36 = vadd.f32 %v1462_v8, %v913_v35 }
 0x205   : > { %v943_v37 = vmax.f32 %v914_v36, 0.0 }
 0x207   : > { %1013 = vmatmul.f32.gmra.mxu1 %v943_v37 }
 0x20a   : > { %v916_v39 = vpop.f32.mrf.mxu0 }
 0x20b   : > { %v917_v40 = vadd.f32 %v1462_v8, %v916_v39 }
 0x20d   : > { %v944_v41 = vmax.f32 %v917_v40, 0.0 }
 0x20f   : > { %1016 = vmatmul.f32.gmra.mxu1 %v944_v41 }
 0x212   : > { %v919_v42 = vpop.f32.mrf.mxu0 }
 0x213   : > { %v920_v43 = vadd.f32 %v1462_v8, %v919_v42 }
 0x215   : > { %v945_v44 = vmax.f32 %v920_v43, 0.0 }
 0x217   : > { %1019 = vmatmul.f32.gmra.mxu1 %v945_v44 }
 0x21a   : > { %v922_v45 = vpop.f32.mrf.mxu0 }
 0x21b   : > { %v923_v46 = vadd.f32 %v1462_v8, %v922_v45 }
 0x21d   : > { %v946_v4 = vmax.f32 %v923_v46, 0.0 }
 0x21f   : > { %1022 = vmatmul.f32.gmra.mxu1 %v946_v4 }
 0x222   : > { %v925_v47 = vpop.f32.mrf.mxu0 }
 0x223   : > { %v926_v48 = vadd.f32 %v1462_v8, %v925_v47 }
 0x225   : > { %v947_v49 = vmax.f32 %v926_v48, 0.0 }
 0x227   : > { %1025 = vmatmul.f32.gmra.mxu1 %v947_v49 }
 0x22a   : > { %v928_v50 = vpop.f32.mrf.mxu0 }
 0x22b   : > { %v929_v51 = vadd.f32 %v1462_v8, %v928_v50 }
 0x22d   : > { %v948_v52 = vmax.f32 %v929_v51, 0.0 }
 0x22f   : > { %1028 = vmatmul.f32.gmra.mxu1 %v948_v52 }
 0x238   : > { %v931_v53 = vpop.f32.mrf.mxu2 }
 0x239   : > { %v932_v54 = vadd.f32 %v1462_v8, %v931_v53 }
 0x23b   : > { %v949_v56 = vmax.f32 %v932_v54, 0.0 }
 0x23c   : > { %v987_v57 = vpop.f32.mrf.mxu1 }
 0x23d   : > { %v988_v58 = vadd.f32 %v1463_v55, %v987_v57  ;;  %1031 = vmatmul.f32.gmra.mxu1 %v949_v56 }
 0x23f   : > { %1035 = vmax.xlane.f32.xlu0 %v988_v58 }
 0x244   : > { %v990_v59 = vpop.f32.mrf.mxu1 }
 0x245   : > { %v991_v60 = vadd.f32 %v1463_v55, %v990_v59 }
 0x247   : > { %1037 = vmax.xlane.f32.xlu0 %v991_v60 }
 0x24c   : > { %v993_v61 = vpop.f32.mrf.mxu1 }
 0x24d   : > { %v994_v62 = vadd.f32 %v1463_v55, %v993_v61 }
 0x24f   : > { %1039 = vmax.xlane.f32.xlu1 %v994_v62 }
 0x254   : > { %v996_v63 = vpop.f32.mrf.mxu1 }
 0x255   : > { %v997_v0 = vadd.f32 %v1463_v55, %v996_v63 }
 0x257   : > { %1041 = vmax.xlane.f32.xlu1 %v997_v0 }
 0x25c   : > { %v999_v1 = vpop.f32.mrf.mxu1 }
 0x25d   : > { %v1000_v2 = vadd.f32 %v1463_v55, %v999_v1 }
 0x25f   : > { %1043 = vmax.xlane.f32.xlu2 %v1000_v2 }
 0x264   : > { %v1002_v3 = vpop.f32.mrf.mxu1 }
 0x265   : > { %v1003_v5 = vadd.f32 %v1463_v55, %v1002_v3 }
 0x267   : > { %1045 = vmax.xlane.f32.xlu2 %v1003_v5 }
 0x26c   : > { %v1005_v6 = vpop.f32.mrf.mxu1 }
 0x26d   : > { %v2057_v7 = vadd.f32 %v1463_v55, %v1005_v6 }
 0x26f   : > { %1047 = vmax.xlane.f32.xlu0 %v2057_v7 }
 0x274   : > { %v1008_v8 = vpop.f32.mrf.mxu1 }
 0x275   : > { %v2060_v9 = vadd.f32 %v1463_v55, %v1008_v8 }
 0x277   : > { %1049 = vmax.xlane.f32.xlu1 %v2060_v9 }
 0x27c   : > { %v1011_v10 = vpop.f32.mrf.mxu1 }
 0x27d   : > { %v2063_v11 = vadd.f32 %v1463_v55, %v1011_v10 }
 0x27f   : > { %1051 = vmax.xlane.f32.xlu2 %v2063_v11 }
 0x284   : > { %v1014_v12 = vpop.f32.mrf.mxu1 }
 0x285   : > { %v2066_v13 = vadd.f32 %v1463_v55, %v1014_v12 }
 0x287   : > { %1053 = vmax.xlane.f32.xlu0 %v2066_v13 }
 0x28c   : > { %v1017_v14 = vpop.f32.mrf.mxu1 }
 0x28d   : > { %v2069_v15 = vadd.f32 %v1463_v55, %v1017_v14 }
 0x28f   : > { %1055 = vmax.xlane.f32.xlu1 %v2069_v15 }
 0x294   : > { %v1020_v16 = vpop.f32.mrf.mxu1 }
 0x295   : > { %v2072_v17 = vadd.f32 %v1463_v55, %v1020_v16 }
 0x297   : > { %1057 = vmax.xlane.f32.xlu2 %v2072_v17 }
 0x29c   : > { %v1023_v18 = vpop.f32.mrf.mxu1 }
 0x29d   : > { %v2075_v38 = vadd.f32 %v1463_v55, %v1023_v18 }
 0x29f   : > { %1059 = vmax.xlane.f32.xlu0 %v2075_v38 }
 0x2a4   : > { %v1026_v19 = vpop.f32.mrf.mxu1 }
 0x2a5   : > { %v2078_v20 = vadd.f32 %v1463_v55, %v1026_v19 }
 0x2a7   : > { %1061 = vmax.xlane.f32.xlu1 %v2078_v20 }
 0x2ac   : > { %v1029_v21 = vpop.f32.mrf.mxu1 }
 0x2ad   : > { %v2081_v22 = vadd.f32 %v1463_v55, %v1029_v21 }
 0x2af   : > { %1063 = vmax.xlane.f32.xlu2 %v2081_v22 }
 0x2b2   : > { %v1036_v23 = vpop.xlane.xlu0 %1035 }
 0x2b3   : > { %v2084_v24 = vsub.f32 %v988_v58, %v1036_v23 }
 0x2b5   : > { %v1083_v25 = vmul.f32 1.442695, %v2084_v24 }
 0x2b7   : > { %1464 = vpow2.f32 %v1083_v25 }
 0x2ba   : > { %v1038_v26 = vpop.xlane.xlu0 %1037  ;;  %v1032_v27 = vpop.f32.mrf.mxu1 }
 0x2bb   : > { %v2087_v28 = vsub.f32 %v991_v60, %v1038_v26  ;;  %v2089_v29 = vadd.f32 %v1463_v55, %v1032_v27 }
 0x2bd   : > { %v1465_v30 = vpop.eup %1464  ;;  %v1085_v31 = vmul.f32 1.442695, %v2087_v28  ;;  %1065 = vmax.xlane.f32.xlu0 %v2089_v29 }
 0x2be   : > { %1115 = vadd.xlane.f32.xlu1 %v1465_v30 }
 0x2bf   : > { %1466 = vpow2.f32 %v1085_v31 }
 0x2c2   : > { %v1040_v32 = vpop.xlane.xlu1 %1039 }
 0x2c3   : > { %v2093_v33 = vsub.f32 %v994_v62, %v1040_v32 }
 0x2c5   : > { %v1467_v34 = vpop.eup %1466  ;;  %v1087_v35 = vmul.f32 1.442695, %v2093_v33 }
 0x2c6   : > { %1117 = vadd.xlane.f32.xlu2 %v1467_v34 }
 0x2c7   : > { %1468 = vpow2.f32 %v1087_v35 }
 0x2ca   : > { %v1042_v36 = vpop.xlane.xlu1 %1041 }
 0x2cb   : > { %v2096_v37 = vsub.f32 %v997_v0, %v1042_v36 }
 0x2cd   : > { %v1469_v39 = vpop.eup %1468  ;;  %v1089_v40 = vmul.f32 1.442695, %v2096_v37 }
 0x2ce   : > { %1119 = vadd.xlane.f32.xlu0 %v1469_v39 }
 0x2cf   : > { %1470 = vpow2.f32 %v1089_v40 }
 0x2d2   : > { %v1044_v41 = vpop.xlane.xlu2 %1043 }
 0x2d3   : > { %v2099_v42 = vsub.f32 %v1000_v2, %v1044_v41 }
 0x2d5   : > { %v1471_v43 = vpop.eup %1470  ;;  %v1091_v44 = vmul.f32 1.442695, %v2099_v42 }
 0x2d6   : > { %1121 = vadd.xlane.f32.xlu1 %v1471_v43 }
 0x2d7   : > { %1472 = vpow2.f32 %v1091_v44 }
 0x2da   : > { %v1046_v45 = vpop.xlane.xlu2 %1045 }
 0x2db   : > { %v2102_v46 = vsub.f32 %v1003_v5, %v1046_v45 }
 0x2dd   : > { %v1473_v4 = vpop.eup %1472  ;;  %v1093_v47 = vmul.f32 1.442695, %v2102_v46 }
 0x2de   : > { %1123 = vadd.xlane.f32.xlu2 %v1473_v4 }
 0x2df   : > { %1474 = vpow2.f32 %v1093_v47 }
 0x2e2   : > { %v1048_v48 = vpop.xlane.xlu0 %1047 }
 0x2e3   : > { %v2106_v49 = vsub.f32 %v2057_v7, %v1048_v48 }
 0x2e5   : > { %v1475_v50 = vpop.eup %1474  ;;  %v1095_v51 = vmul.f32 1.442695, %v2106_v49 }
 0x2e6   : > { %1125 = vadd.xlane.f32.xlu0 %v1475_v50 }
 0x2e7   : > { %1476 = vpow2.f32 %v1095_v51 }
 0x2ea   : > { %v1050_v52 = vpop.xlane.xlu1 %1049 }
 0x2eb   : > { %v2110_v53 = vsub.f32 %v2060_v9, %v1050_v52 }
 0x2ed   : > { %v1477_v54 = vpop.eup %1476  ;;  %v1097_v55 = vmul.f32 1.442695, %v2110_v53 }
 0x2ee   : > { %1127 = vadd.xlane.f32.xlu1 %v1477_v54 }
 0x2ef   : > { %1478 = vpow2.f32 %v1097_v55 }
 0x2f2   : > { %v1052_v56 = vpop.xlane.xlu2 %1051 }
 0x2f3   : > { %v2114_v57 = vsub.f32 %v2063_v11, %v1052_v56 }
 0x2f5   : > { %v1479_v58 = vpop.eup %1478  ;;  %v1099_v59 = vmul.f32 1.442695, %v2114_v57 }
 0x2f6   : > { %1129 = vadd.xlane.f32.xlu2 %v1479_v58 }
 0x2f7   : > { %1480 = vpow2.f32 %v1099_v59 }
 0x2fa   : > { %v1054_v60 = vpop.xlane.xlu0 %1053 }
 0x2fb   : > { %v2118_v61 = vsub.f32 %v2066_v13, %v1054_v60 }
 0x2fd   : > { %v1481_v62 = vpop.eup %1480  ;;  %v1101_v63 = vmul.f32 1.442695, %v2118_v61 }
 0x2fe   : > { %1131 = vadd.xlane.f32.xlu0 %v1481_v62 }
 0x2ff   : > { %1482 = vpow2.f32 %v1101_v63 }
 0x302   : > { %v1056_v0 = vpop.xlane.xlu1 %1055 }
 0x303   : > { %v2122_v1 = vsub.f32 %v2069_v15, %v1056_v0 }
 0x305   : > { %v1483_v2 = vpop.eup %1482  ;;  %v1103_v3 = vmul.f32 1.442695, %v2122_v1 }
 0x306   : > { %1133 = vadd.xlane.f32.xlu1 %v1483_v2 }
 0x307   : > { %1484 = vpow2.f32 %v1103_v3 }
 0x30a   : > { %v1058_v5 = vpop.xlane.xlu2 %1057 }
 0x30b   : > { %v2126_v6 = vsub.f32 %v2072_v17, %v1058_v5 }
 0x30d   : > { %v1485_v7 = vpop.eup %1484  ;;  %v1105_v8 = vmul.f32 1.442695, %v2126_v6 }
 0x30e   : > { %1135 = vadd.xlane.f32.xlu2 %v1485_v7 }
 0x30f   : > { %1486 = vpow2.f32 %v1105_v8 }
 0x312   : > { %v1060_v9 = vpop.xlane.xlu0 %1059 }
 0x313   : > { %v2130_v10 = vsub.f32 %v2075_v38, %v1060_v9 }
 0x315   : > { %v1487_v11 = vpop.eup %1486  ;;  %v1107_v12 = vmul.f32 1.442695, %v2130_v10 }
 0x316   : > { %1137 = vadd.xlane.f32.xlu0 %v1487_v11 }
 0x317   : > { %1488 = vpow2.f32 %v1107_v12 }
 0x31a   : > { %v1062_v13 = vpop.xlane.xlu1 %1061 }
 0x31b   : > { %v2134_v14 = vsub.f32 %v2078_v20, %v1062_v13 }
 0x31d   : > { %v1489_v15 = vpop.eup %1488  ;;  %v1109_v16 = vmul.f32 1.442695, %v2134_v14 }
 0x31e   : > { %1139 = vadd.xlane.f32.xlu1 %v1489_v15 }
 0x31f   : > { %1490 = vpow2.f32 %v1109_v16 }
 0x322   : > { %v1064_v17 = vpop.xlane.xlu2 %1063 }
 0x323   : > { %v2138_v18 = vsub.f32 %v2081_v22, %v1064_v17 }
 0x325   : > { %v1491_v38 = vpop.eup %1490  ;;  %v1111_v19 = vmul.f32 1.442695, %v2138_v18 }
 0x326   : > { %1141 = vadd.xlane.f32.xlu2 %v1491_v38 }
 0x327   : > { %1492 = vpow2.f32 %v1111_v19 }
 0x32d   : > { %v1493_v21 = vpop.eup %1492 }
 0x32e   : > { %1143 = vadd.xlane.f32.xlu0 %v1493_v21 }
 0x330   : > { %v1066_v20 = vpop.xlane.xlu0 %1065 }
 0x331   : > { %v2142_v23 = vsub.f32 %v2089_v29, %v1066_v20  ;;  %v1116_v25 = vpop.xlane.xlu1 %1115 }
 0x332   : > { %1494 = vlog2.f32 %v1116_v25 }
 0x333   : > { %v1113_v26 = vmul.f32 1.442695, %v2142_v23 }
 0x335   : > { %1496 = vpow2.f32 %v1113_v26 }
 0x338   : > { %v1495_v22 = vpop.eup %1494 }
 0x339   : > { %v1148_v27 = vmul.f32 0.6931472, %v1495_v22  ;;  %v1118_v30 = vpop.xlane.xlu2 %1117 }
 0x33a   : > { %1498 = vlog2.f32 %v1118_v30 }
 0x33b   : > { %v1497_v31 = vpop.eup %1496  ;;  %v1179_v32 = vsub.f32 %v2084_v24, %v1148_v27 }
 0x33c   : > { %1145 = vadd.xlane.f32.xlu1 %v1497_v31 }
 0x33d   : > { %1195 = vst [vmem:[%s2149_s17] sm:$0xff] %v1179_v32 }
 0x340   : > { %v1499_v29 = vpop.eup %1498 }
 0x341   : > { %v1150_v34 = vmul.f32 0.6931472, %v1499_v29  ;;  %v1120_v35 = vpop.xlane.xlu0 %1119 }
 0x342   : > { %1500 = vlog2.f32 %v1120_v35 }
 0x343   : > { %v1180_v36 = vsub.f32 %v2087_v28, %v1150_v34 }
 0x345   : > { %1196 = vst [vmem:[%s2149_s17 + $0x8] sm:$0xff] %v1180_v36 }
 0x348   : > { %v1501_v39 = vpop.eup %1500 }
 0x349   : > { %v1152_v40 = vmul.f32 0.6931472, %v1501_v39  ;;  %v1122_v41 = vpop.xlane.xlu1 %1121 }
 0x34a   : > { %1502 = vlog2.f32 %v1122_v41 }
 0x34b   : > { %v1181_v24 = vsub.f32 %v2093_v33, %v1152_v40 }
 0x34d   : > { %1197 = vst [vmem:[%s2149_s17 + $0x10] sm:$0xff] %v1181_v24 }
 0x350   : > { %v1503_v43 = vpop.eup %1502 }
 0x351   : > { %v1154_v44 = vmul.f32 0.6931472, %v1503_v43  ;;  %v1124_v45 = vpop.xlane.xlu2 %1123 }
 0x352   : > { %1504 = vlog2.f32 %v1124_v45 }
 0x353   : > { %v1182_v4 = vsub.f32 %v2096_v37, %v1154_v44 }
 0x355   : > { %1198 = vst [vmem:[%s2149_s17 + $0x18] sm:$0xff] %v1182_v4 }
 0x358   : > { %v1505_v47 = vpop.eup %1504 }
 0x359   : > { %v1156_v48 = vmul.f32 0.6931472, %v1505_v47  ;;  %v1126_v28 = vpop.xlane.xlu0 %1125 }
 0x35a   : > { %1506 = vlog2.f32 %v1126_v28 }
 0x35b   : > { %v1183_v50 = vsub.f32 %v2099_v42, %v1156_v48 }
 0x35d   : > { %1199 = vst [vmem:[%s2149_s17 + $0x20] sm:$0xff] %v1183_v50 }
 0x360   : > { %v1507_v51 = vpop.eup %1506 }
 0x361   : > { %v1158_v52 = vmul.f32 0.6931472, %v1507_v51  ;;  %v1128_v33 = vpop.xlane.xlu1 %1127 }
 0x362   : > { %1508 = vlog2.f32 %v1128_v33 }
 0x363   : > { %v1184_v54 = vsub.f32 %v2102_v46, %v1158_v52 }
 0x365   : > { %1200 = vst [vmem:[%s2149_s17 + $0x28] sm:$0xff] %v1184_v54 }
 0x368   : > { %v1509_v55 = vpop.eup %1508 }
 0x369   : > { %v1160_v56 = vmul.f32 0.6931472, %v1509_v55  ;;  %v1130_v37 = vpop.xlane.xlu2 %1129 }
 0x36a   : > { %1510 = vlog2.f32 %v1130_v37 }
 0x36b   : > { %v1185_v58 = vsub.f32 %v2106_v49, %v1160_v56 }
 0x36d   : > { %1201 = vst [vmem:[%s2149_s17 + $0x30] sm:$0xff] %v1185_v58 }
 0x370   : > { %v1511_v59 = vpop.eup %1510 }
 0x371   : > { %v1162_v60 = vmul.f32 0.6931472, %v1511_v59  ;;  %v1132_v42 = vpop.xlane.xlu0 %1131 }
 0x372   : > { %1512 = vlog2.f32 %v1132_v42 }
 0x373   : > { %v1186_v62 = vsub.f32 %v2110_v53, %v1162_v60 }
 0x375   : > { %1202 = vst [vmem:[%s2149_s17 + $0x38] sm:$0xff] %v1186_v62 }
 0x378   : > { %v1513_v63 = vpop.eup %1512 }
 0x379   : > { %v1164_v0 = vmul.f32 0.6931472, %v1513_v63  ;;  %v1134_v46 = vpop.xlane.xlu1 %1133 }
 0x37a   : > { %1514 = vlog2.f32 %v1134_v46 }
 0x37b   : > { %v1187_v2 = vsub.f32 %v2114_v57, %v1164_v0 }
 0x37d   : > { %1203 = vst [vmem:[%s2149_s17 + $0x40] sm:$0xff] %v1187_v2 }
 0x380   : > { %v1515_v3 = vpop.eup %1514 }
 0x381   : > { %v1166_v5 = vmul.f32 0.6931472, %v1515_v3  ;;  %v1136_v49 = vpop.xlane.xlu2 %1135 }
 0x382   : > { %1516 = vlog2.f32 %v1136_v49 }
 0x383   : > { %v1188_v7 = vsub.f32 %v2118_v61, %v1166_v5 }
 0x385   : > { %1204 = vst [vmem:[%s2149_s17 + $0x48] sm:$0xff] %v1188_v7 }
 0x388   : > { %v1517_v8 = vpop.eup %1516 }
 0x389   : > { %v1168_v9 = vmul.f32 0.6931472, %v1517_v8  ;;  %v1138_v53 = vpop.xlane.xlu0 %1137 }
 0x38a   : > { %1518 = vlog2.f32 %v1138_v53 }
 0x38b   : > { %v1189_v11 = vsub.f32 %v2122_v1, %v1168_v9 }
 0x38d   : > { %1205 = vst [vmem:[%s2149_s17 + $0x50] sm:$0xff] %v1189_v11 }
 0x390   : > { %v1519_v12 = vpop.eup %1518 }
 0x391   : > { %v1170_v13 = vmul.f32 0.6931472, %v1519_v12  ;;  %v1140_v57 = vpop.xlane.xlu1 %1139 }
 0x392   : > { %1520 = vlog2.f32 %v1140_v57 }
 0x393   : > { %v1190_v15 = vsub.f32 %v2126_v6, %v1170_v13 }
 0x395   : > { %1206 = vst [vmem:[%s2149_s17 + $0x58] sm:$0xff] %v1190_v15 }
 0x398   : > { %v1521_v16 = vpop.eup %1520 }
 0x399   : > { %v1172_v61 = vmul.f32 0.6931472, %v1521_v16  ;;  %v1142_v17 = vpop.xlane.xlu2 %1141 }
 0x39a   : > { %1522 = vlog2.f32 %v1142_v17 }
 0x39b   : > { %v1191_v38 = vsub.f32 %v2130_v10, %v1172_v61 }
 0x39d   : > { %1207 = vst [vmem:[%s2149_s17 + $0x60] sm:$0xff] %v1191_v38 }
 0x3a0   : > { %v1523_v1 = vpop.eup %1522 }
 0x3a1   : > { %v1174_v19 = vmul.f32 0.6931472, %v1523_v1  ;;  %v1144_v21 = vpop.xlane.xlu0 %1143 }
 0x3a2   : > { %1524 = vlog2.f32 %v1144_v21 }
 0x3a3   : > { %v1192_v20 = vsub.f32 %v2134_v14, %v1174_v19 }
 0x3a5   : > { %1208 = vst [vmem:[%s2149_s17 + $0x68] sm:$0xff] %v1192_v20 }
 0x3a8   : > { %v1525_v6 = vpop.eup %1524 }
 0x3a9   : > { %v1176_v25 = vmul.f32 0.6931472, %v1525_v6 }
 0x3ab   : > { %v1193_v26 = vsub.f32 %v2138_v18, %v1176_v25 }
 0x3ad   : > { %1209 = vst [vmem:[%s2149_s17 + $0x70] sm:$0xff] %v1193_v26 }
 0x3af   : > { %v1146_v22 = vpop.xlane.xlu1 %1145 }
 0x3b0   : > { %1526 = vlog2.f32 %v1146_v22 }
 0x3b6   : > { %v1527_v10 = vpop.eup %1526 }
 0x3b7   : > { %v1178_v14 = vmul.f32 0.6931472, %v1527_v10 }
 0x3b9   : > { %v1194_v27 = vsub.f32 %v2142_v23, %v1178_v14 }
 0x3bb   : > { %1210 = vst [vmem:[%s2149_s17 + $0x78] sm:$0xff] %v1194_v27 }
 0x3bc   : > { %1615 = shalt.err (!%p1612_p8)
}
 0x3bd   : > { %s1664_s28 = smov 128   ;;  %s1665_s17 = smov 8  }
 0x3be   : > { %1404 = dma.vmem_to_hbm [thread:$0]  (%p1754_p5), %s1225_s16, 2048, %s1227_s25, %s1212_s21, %s1664_s28, %s1664_s28, %s1665_s17  }
 0x3bf PF: > { %p1421_p9 = scmp.ge.s32.totalorder %s1658_s12, 2  ;;  %s1241_s23 = sand.u32 1, %s1646_s30  }
 0x3c0   : > { %s1242_s27 = scalar_lea.sflag [#allocation4], %s1241_s23 }
 0x3c1   : > { %p1414_p10 = pnand %p1421_p9, %p1758_p6 }
 0x3c3   : > { %p1415_p11 = pneg %p1414_p10 }
 0x3c5   : > { %1641 = dma.done.wait (%p1415_p11), %s1242_s27, 2048  }
 0x3c6   : > { %1643 = vsyncadd (%p1415_p11), %s1242_s27, 4294965248  ;;  %p21_p12 = scmp.ge.s32.totalorder %s1741_s15, 4   ;;  %s2230_s30 = smov %s1650_s10 }
 0x3c7   : > { %s2231_s10 = smov %s1654_s11  ;;  %s2232_s11 = smov %s1752_s18 }
 0x3c8   : > { %s2233_s12 = smov %s1741_s15  ;;  %23 = sbr.rel (!%p21_p12) target bundleno = 5 (0x5), region = 100 }
 0x3cd   :  { %1248 = vsyncpa [#allocation3], 1 }
 0x3ce   :  { %1250 = vsyncpa [#allocation3 + $0x1], 1 }
 0x3cf   :  { %1251 = vsyncpa [#allocation6], 1 }
 0x3d0   :  { %1252 = vsyncpa [#allocation4], 1 }
 0x3d1   :  { %1254 = vsyncpa [#allocation4 + $0x1], 1 }

</bundles_post_ra>
